<compile_context>
chip_gen: v6e
topology: v6e:2x2x1
jax: 0.10.0
libtpu: 0.0.40
codegen_flags: <defaults>
</compile_context>

<pallas_src>
import jax
import jax.numpy as jnp
import numpy as np
from jax.experimental import pallas as pl
from jax.experimental.pallas import tpu as pltpu


def _round_up(x, m):
    return ((x + m - 1) // m) * m


def _make_kernel(tap_offsets, l_out):
    def kernel(x_ref, w_ref, b_ref, o_ref, acc_ref):
        # x_ref  : (1, Ctile, L_in)        bf16 flattened padded input chunk
        # w_ref  : (18, Cout_pad, Ctile)   bf16 per-tap weights (Cin innermost)
        # b_ref  : (Cout_pad, 1)           f32, b0 + b1 folded
        # o_ref  : (1, Cout_pad, L_out)    output block (resident over Cin axis)
        # acc_ref: (Cout_pad, L_out)       f32 accumulator scratch
        c = pl.program_id(1)

        @pl.when(c == 0)
        def _():
            acc_ref[...] = jnp.zeros_like(acc_ref)

        # Per-tap MXU accumulation (no im2col buffer).  Each dilated-conv tap
        # is a contiguous lane shift of the flattened image: one static slice.
        partial = None
        for t, off in enumerate(tap_offsets):
            contrib = jax.lax.dot_general(
                w_ref[t], x_ref[0, :, off:off + l_out],
                dimension_numbers=(((1,), (0,)), ((), ())),
                preferred_element_type=jnp.float32)          # (Cout_pad, L_out)
            partial = contrib if partial is None else partial + contrib
        acc_ref[...] += partial

        @pl.when(c == pl.num_programs(1) - 1)
        def _():
            o_ref[0, :, :] = (acc_ref[...] + b_ref[...]).astype(o_ref.dtype)

    return kernel


def classifier_module_forward(x_nchw, params, dilation_series, padding_series):
    """x_nchw: (N, Cin, H, W). params: list of (weight (Cout,Cin,3,3), bias (Cout,))."""
    # Only the first two convs matter (early return in the PyTorch forward).
    d0, d1 = dilation_series[0], dilation_series[1]
    p0, p1 = padding_series[0], padding_series[1]
    (w0, b0), (w1, b1) = params[0], params[1]

    N, Cin, H, W = x_nchw.shape
    Cout = w0.shape[0]
    out_dtype = x_nchw.dtype

    # PyTorch output size: H + 2p - d*(3-1)
    Ho = H + 2 * p0 - 2 * d0
    Wo = W + 2 * p0 - 2 * d0
    assert Ho == H + 2 * p1 - 2 * d1 and Wo == W + 2 * p1 - 2 * d1, \
        "the two contributing convs must produce identical output shapes"

    # Zero-pad with max(p) on both sides: valid for every (d, p) combination.
    pad = max(p0, p1)
    Hp, Wp = H + 2 * pad, W + 2 * pad

    # Tap (kh, kw) of conv (d, p) reads padded pixel (h + oh, w + ow) with
    # oh = pad - p + kh*d, ow = pad - p + kw*d  ->  flat offset oh*Wp + ow.
    tap_offsets = []
    for (d, p) in ((d0, p0), (d1, p1)):
        for kh in range(3):
            for kw in range(3):
                tap_offsets.append((pad - p + kh * d) * Wp + (pad - p + kw * d))
    n_taps = len(tap_offsets)
    off_max = max(tap_offsets)

    LANE, SUB = 128, 8
    l_out = _round_up(Ho * Wp, LANE)                       # lane-dense output
    l_in = _round_up(max(Hp * Wp, l_out + off_max), LANE)  # covers every shift

    # Cin tiling for the reduction grid axis: tiles are multiples of 8 and
    # either equal the (padded) channel count or are 128-lane aligned.
    cin_tile = min(256, _round_up(Cin, SUB))
    cin_pad = _round_up(Cin, cin_tile)
    n_cin = cin_pad // cin_tile
    cout_pad = _round_up(Cout, SUB)

    # Pad spatially, flatten spatial onto the lane axis, pad channels + lane
    # tail with real zeros, cast to bf16 (halves HBM->VMEM traffic).
    xp = jnp.pad(x_nchw, ((0, 0), (0, 0), (pad, pad), (pad, pad)))
    xf = jnp.pad(xp.reshape(N, Cin, Hp * Wp),
                 ((0, 0), (0, cin_pad - Cin), (0, l_in - Hp * Wp)))
    xf = xf.astype(jnp.bfloat16)

    # Per-tap weight matrices: (18, Cout_pad, Cin_pad), Cin innermost (lanes).
    def taps_w(w_oihw):  # (Cout, Cin, 3, 3) -> (9, Cout, Cin), tap = kh*3 + kw
        return jnp.transpose(w_oihw, (2, 3, 0, 1)).reshape(9, Cout, Cin)

    w_taps = jnp.concatenate([taps_w(w0), taps_w(w1)], axis=0)
    w_taps = jnp.pad(w_taps, ((0, 0), (0, cout_pad - Cout), (0, cin_pad - Cin)))
    w_taps = w_taps.astype(jnp.bfloat16)

    b_sum = jnp.pad((b0 + b1).reshape(Cout, 1),
                    ((0, cout_pad - Cout), (0, 0))).astype(jnp.float32)

    kernel = _make_kernel(tuple(tap_offsets), l_out)

    # NOTE: weights/bias are grid-invariant; if VMEM gets tight (v7x) they
    # could use pipeline_mode=pl.Buffered(1), but they are tiny here.
    out_flat = pl.pallas_call(
        kernel,
        out_shape=jax.ShapeDtypeStruct((N, cout_pad, l_out), out_dtype),
        grid_spec=pltpu.PrefetchScalarGridSpec(
            num_scalar_prefetch=0,
            grid=(N, n_cin),
            in_specs=[
                pl.BlockSpec((1, cin_tile, l_in), lambda n, c: (n, c, 0)),
                pl.BlockSpec((n_taps, cout_pad, cin_tile), lambda n, c: (0, 0, c)),
                pl.BlockSpec((cout_pad, 1), lambda n, c: (0, 0)),
            ],
            out_specs=pl.BlockSpec((1, cout_pad, l_out), lambda n, c: (n, 0, 0)),
            scratch_shapes=[pltpu.VMEM((cout_pad, l_out), jnp.float32)],
        ),
        compiler_params=pltpu.CompilerParams(
            dimension_semantics=("parallel", "arbitrary"),
            vmem_limit_bytes=64 * 1024 * 1024),
    )(xf, w_taps, b_sum)

    # Flat (Ho * Wp on lanes) -> (N, Cout, Ho, Wo): reshape + slice only,
    # no transposes anywhere in the wrapper.
    out = out_flat[:, :Cout, :Ho * Wp].reshape(N, Cout, Ho, Wp)[:, :, :, :Wo]
    return out


def _reference(x_nchw, params, dilation_series, padding_series):
    """Plain-JAX reference using lax.conv_general_dilated (PyTorch semantics)."""
    def conv(x, w, b, d, p):
        y = jax.lax.conv_general_dilated(
            x, w, window_strides=(1, 1),
            padding=((p, p), (p, p)),
            rhs_dilation=(d, d),
            dimension_numbers=("NCHW", "OIHW", "NCHW"))
        return y + b.reshape(1, -1, 1, 1)

    out = conv(x_nchw, params[0][0], params[0][1],
               dilation_series[0], padding_series[0])
    out = out + conv(x_nchw, params[1][0], params[1][1],
                     dilation_series[1], padding_series[1])
    return out


if __name__ == "__main__":
    # Module config (small, consistent with Classifier_Module.__init__).
    inplanes = 4
    num_classes = 8
    dilation_series = [2, 4, 8, 12]
    padding_series = [2, 4, 8, 12]

    N, H, W = 2, 16, 16

    key = jax.random.PRNGKey(0)
    # Deterministic synthetic parameters for every conv in the ModuleList
    # (only the first two participate in the forward pass).
    params = []
    for i in range(len(dilation_series)):
        key, kw_, kb_ = jax.random.split(key, 3)
        w = jax.random.normal(kw_, (num_classes, inplanes, 3, 3), jnp.float32) * 0.1
        b = jax.random.normal(kb_, (num_classes,), jnp.float32) * 0.1
        params.append((w, b))

    key, kx = jax.random.split(key)
    x = jax.random.normal(kx, (N, inplanes, H, W), jnp.float32)

    out = classifier_module_forward(x, params, dilation_series, padding_series)
    out = jax.block_until_ready(out)

    ref = _reference(x, params, dilation_series, padding_series)
    # bf16 inputs/weights with f32 accumulation: loosened tolerance vs f32 ref.
    np.testing.assert_allclose(np.asarray(out), np.asarray(ref), atol=5e-2, rtol=5e-2)

    print("KERNEL_OK")
</pallas_src>

<mosaic_0001>
module attributes {stable_mosaic.version = 11 : i64} {
  func.func @kernel(%arg0: i32, %arg1: i32, %arg2: memref<1x8x640xbf16, #tpu.memory_space<vmem>>, %arg3: memref<18x8x8xbf16, #tpu.memory_space<vmem>>, %arg4: memref<8x1xf32, #tpu.memory_space<vmem>>, %arg5: memref<1x8x384xf32, #tpu.memory_space<vmem>>, %arg6: memref<8x384xf32, #tpu.memory_space<vmem>>) attributes {dimension_semantics = [#tpu.dimension_semantics<parallel>, #tpu.dimension_semantics<arbitrary>], iteration_bounds = array<i64: 2, 1>, scalar_prefetch = 0 : i64, scratch_operands = 1 : i64, tpu.core_type = #tpu.core_type<tc>, window_params = [{transform_indices = @transform_0, window_bounds = array<i64: 1, 8, 640>}, {transform_indices = @transform_1, window_bounds = array<i64: 18, 8, 8>}, {pipeline_mode = #tpu.pipeline_mode<synchronous>, transform_indices = @transform_2, window_bounds = array<i64: 8, 1>}, {transform_indices = @transform_3, window_bounds = array<i64: 1, 8, 384>}]} {
    %c0_i32 = arith.constant 0 : i32
    %0 = arith.cmpi eq, %arg1, %c0_i32 : i32
    %1 = arith.extui %0 : i1 to i32
    %c0_i32_0 = arith.constant 0 : i32
    %2 = arith.cmpi ne, %1, %c0_i32_0 : i32
    scf.if %2 {
      %cst_100 = arith.constant 0.000000e+00 : f32
      %116 = vector.broadcast %cst_100 : f32 to vector<8x384xf32>
      %c0_101 = arith.constant 0 : index
      %c0_102 = arith.constant 0 : index
      %117 = vector.load %arg6[%c0_101, %c0_102] : memref<8x384xf32, #tpu.memory_space<vmem>>, vector<8x384xf32>
      tpu.vector_store %arg6[%c0_101, %c0_102], %116 {strides = array<i32>} : memref<8x384xf32, #tpu.memory_space<vmem>>, vector<8x384xf32>,
    } else {
    }
    %c0 = arith.constant 0 : index
    %c0_1 = arith.constant 0 : index
    %c0_2 = arith.constant 0 : index
    %3 = vector.load %arg3[%c0, %c0_1, %c0_2] : memref<18x8x8xbf16, #tpu.memory_space<vmem>>, vector<1x8x8xbf16>
    %4 = vector.shape_cast %3 : vector<1x8x8xbf16> to vector<8x8xbf16>
    %c0_3 = arith.constant 0 : index
    %c0_4 = arith.constant 0 : index
    %c50 = arith.constant 50 : index
    %5 = vector.load %arg2[%c0_3, %c0_4, %c50] : memref<1x8x640xbf16, #tpu.memory_space<vmem>>, vector<1x8x384xbf16>
    %6 = vector.shape_cast %5 : vector<1x8x384xbf16> to vector<8x384xbf16>
    %cst = arith.constant dense<0.000000e+00> : vector<8x384xf32>
    %7 = tpu.matmul %4, %6, %cst {dimension_numbers = #tpu.dot_dimension_numbers<[1], [0], [0], [1], [0, 0, 1, 1], [], []>} : vector<8x8xbf16>, vector<8x384xbf16>, vector<8x384xf32> -> vector<8x384xf32>
    %c1 = arith.constant 1 : index
    %c0_5 = arith.constant 0 : index
    %c0_6 = arith.constant 0 : index
    %8 = vector.load %arg3[%c1, %c0_5, %c0_6] : memref<18x8x8xbf16, #tpu.memory_space<vmem>>, vector<1x8x8xbf16>
    %9 = vector.shape_cast %8 : vector<1x8x8xbf16> to vector<8x8xbf16>
    %c0_7 = arith.constant 0 : index
    %c0_8 = arith.constant 0 : index
    %c52 = arith.constant 52 : index
    %10 = vector.load %arg2[%c0_7, %c0_8, %c52] : memref<1x8x640xbf16, #tpu.memory_space<vmem>>, vector<1x8x384xbf16>
    %11 = vector.shape_cast %10 : vector<1x8x384xbf16> to vector<8x384xbf16>
    %cst_9 = arith.constant dense<0.000000e+00> : vector<8x384xf32>
    %12 = tpu.matmul %9, %11, %cst_9 {dimension_numbers = #tpu.dot_dimension_numbers<[1], [0], [0], [1], [0, 0, 1, 1], [], []>} : vector<8x8xbf16>, vector<8x384xbf16>, vector<8x384xf32> -> vector<8x384xf32>
    %13 = arith.addf %7, %12 : vector<8x384xf32>
    %c2 = arith.constant 2 : index
    %c0_10 = arith.constant 0 : index
    %c0_11 = arith.constant 0 : index
    %14 = vector.load %arg3[%c2, %c0_10, %c0_11] : memref<18x8x8xbf16, #tpu.memory_space<vmem>>, vector<1x8x8xbf16>
    %15 = vector.shape_cast %14 : vector<1x8x8xbf16> to vector<8x8xbf16>
    %c0_12 = arith.constant 0 : index
    %c0_13 = arith.constant 0 : index
    %c54 = arith.constant 54 : index
    %16 = vector.load %arg2[%c0_12, %c0_13, %c54] : memref<1x8x640xbf16, #tpu.memory_space<vmem>>, vector<1x8x384xbf16>
    %17 = vector.shape_cast %16 : vector<1x8x384xbf16> to vector<8x384xbf16>
    %cst_14 = arith.constant dense<0.000000e+00> : vector<8x384xf32>
    %18 = tpu.matmul %15, %17, %cst_14 {dimension_numbers = #tpu.dot_dimension_numbers<[1], [0], [0], [1], [0, 0, 1, 1], [], []>} : vector<8x8xbf16>, vector<8x384xbf16>, vector<8x384xf32> -> vector<8x384xf32>
    %19 = arith.addf %13, %18 : vector<8x384xf32>
    %c3 = arith.constant 3 : index
    %c0_15 = arith.constant 0 : index
    %c0_16 = arith.constant 0 : index
    %20 = vector.load %arg3[%c3, %c0_15, %c0_16] : memref<18x8x8xbf16, #tpu.memory_space<vmem>>, vector<1x8x8xbf16>
    %21 = vector.shape_cast %20 : vector<1x8x8xbf16> to vector<8x8xbf16>
    %c0_17 = arith.constant 0 : index
    %c0_18 = arith.constant 0 : index
    %c98 = arith.constant 98 : index
    %22 = vector.load %arg2[%c0_17, %c0_18, %c98] : memref<1x8x640xbf16, #tpu.memory_space<vmem>>, vector<1x8x384xbf16>
    %23 = vector.shape_cast %22 : vector<1x8x384xbf16> to vector<8x384xbf16>
    %cst_19 = arith.constant dense<0.000000e+00> : vector<8x384xf32>
    %24 = tpu.matmul %21, %23, %cst_19 {dimension_numbers = #tpu.dot_dimension_numbers<[1], [0], [0], [1], [0, 0, 1, 1], [], []>} : vector<8x8xbf16>, vector<8x384xbf16>, vector<8x384xf32> -> vector<8x384xf32>
    %25 = arith.addf %19, %24 : vector<8x384xf32>
    %c4 = arith.constant 4 : index
    %c0_20 = arith.constant 0 : index
    %c0_21 = arith.constant 0 : index
    %26 = vector.load %arg3[%c4, %c0_20, %c0_21] : memref<18x8x8xbf16, #tpu.memory_space<vmem>>, vector<1x8x8xbf16>
    %27 = vector.shape_cast %26 : vector<1x8x8xbf16> to vector<8x8xbf16>
    %c0_22 = arith.constant 0 : index
    %c0_23 = arith.constant 0 : index
    %c100 = arith.constant 100 : index
    %28 = vector.load %arg2[%c0_22, %c0_23, %c100] : memref<1x8x640xbf16, #tpu.memory_space<vmem>>, vector<1x8x384xbf16>
    %29 = vector.shape_cast %28 : vector<1x8x384xbf16> to vector<8x384xbf16>
    %cst_24 = arith.constant dense<0.000000e+00> : vector<8x384xf32>
    %30 = tpu.matmul %27, %29, %cst_24 {dimension_numbers = #tpu.dot_dimension_numbers<[1], [0], [0], [1], [0, 0, 1, 1], [], []>} : vector<8x8xbf16>, vector<8x384xbf16>, vector<8x384xf32> -> vector<8x384xf32>
    %31 = arith.addf %25, %30 : vector<8x384xf32>
    %c5 = arith.constant 5 : index
    %c0_25 = arith.constant 0 : index
    %c0_26 = arith.constant 0 : index
    %32 = vector.load %arg3[%c5, %c0_25, %c0_26] : memref<18x8x8xbf16, #tpu.memory_space<vmem>>, vector<1x8x8xbf16>
    %33 = vector.shape_cast %32 : vector<1x8x8xbf16> to vector<8x8xbf16>
    %c0_27 = arith.constant 0 : index
    %c0_28 = arith.constant 0 : index
    %c102 = arith.constant 102 : index
    %34 = vector.load %arg2[%c0_27, %c0_28, %c102] : memref<1x8x640xbf16, #tpu.memory_space<vmem>>, vector<1x8x384xbf16>
    %35 = vector.shape_cast %34 : vector<1x8x384xbf16> to vector<8x384xbf16>
    %cst_29 = arith.constant dense<0.000000e+00> : vector<8x384xf32>
    %36 = tpu.matmul %33, %35, %cst_29 {dimension_numbers = #tpu.dot_dimension_numbers<[1], [0], [0], [1], [0, 0, 1, 1], [], []>} : vector<8x8xbf16>, vector<8x384xbf16>, vector<8x384xf32> -> vector<8x384xf32>
    %37 = arith.addf %31, %36 : vector<8x384xf32>
    %c6 = arith.constant 6 : index
    %c0_30 = arith.constant 0 : index
    %c0_31 = arith.constant 0 : index
    %38 = vector.load %arg3[%c6, %c0_30, %c0_31] : memref<18x8x8xbf16, #tpu.memory_space<vmem>>, vector<1x8x8xbf16>
    %39 = vector.shape_cast %38 : vector<1x8x8xbf16> to vector<8x8xbf16>
    %c0_32 = arith.constant 0 : index
    %c0_33 = arith.constant 0 : index
    %c146 = arith.constant 146 : index
    %40 = vector.load %arg2[%c0_32, %c0_33, %c146] : memref<1x8x640xbf16, #tpu.memory_space<vmem>>, vector<1x8x384xbf16>
    %41 = vector.shape_cast %40 : vector<1x8x384xbf16> to vector<8x384xbf16>
    %cst_34 = arith.constant dense<0.000000e+00> : vector<8x384xf32>
    %42 = tpu.matmul %39, %41, %cst_34 {dimension_numbers = #tpu.dot_dimension_numbers<[1], [0], [0], [1], [0, 0, 1, 1], [], []>} : vector<8x8xbf16>, vector<8x384xbf16>, vector<8x384xf32> -> vector<8x384xf32>
    %43 = arith.addf %37, %42 : vector<8x384xf32>
    %c7 = arith.constant 7 : index
    %c0_35 = arith.constant 0 : index
    %c0_36 = arith.constant 0 : index
    %44 = vector.load %arg3[%c7, %c0_35, %c0_36] : memref<18x8x8xbf16, #tpu.memory_space<vmem>>, vector<1x8x8xbf16>
    %45 = vector.shape_cast %44 : vector<1x8x8xbf16> to vector<8x8xbf16>
    %c0_37 = arith.constant 0 : index
    %c0_38 = arith.constant 0 : index
    %c148 = arith.constant 148 : index
    %46 = vector.load %arg2[%c0_37, %c0_38, %c148] : memref<1x8x640xbf16, #tpu.memory_space<vmem>>, vector<1x8x384xbf16>
    %47 = vector.shape_cast %46 : vector<1x8x384xbf16> to vector<8x384xbf16>
    %cst_39 = arith.constant dense<0.000000e+00> : vector<8x384xf32>
    %48 = tpu.matmul %45, %47, %cst_39 {dimension_numbers = #tpu.dot_dimension_numbers<[1], [0], [0], [1], [0, 0, 1, 1], [], []>} : vector<8x8xbf16>, vector<8x384xbf16>, vector<8x384xf32> -> vector<8x384xf32>
    %49 = arith.addf %43, %48 : vector<8x384xf32>
    %c8 = arith.constant 8 : index
    %c0_40 = arith.constant 0 : index
    %c0_41 = arith.constant 0 : index
    %50 = vector.load %arg3[%c8, %c0_40, %c0_41] : memref<18x8x8xbf16, #tpu.memory_space<vmem>>, vector<1x8x8xbf16>
    %51 = vector.shape_cast %50 : vector<1x8x8xbf16> to vector<8x8xbf16>
    %c0_42 = arith.constant 0 : index
    %c0_43 = arith.constant 0 : index
    %c150 = arith.constant 150 : index
    %52 = vector.load %arg2[%c0_42, %c0_43, %c150] : memref<1x8x640xbf16, #tpu.memory_space<vmem>>, vector<1x8x384xbf16>
    %53 = vector.shape_cast %52 : vector<1x8x384xbf16> to vector<8x384xbf16>
    %cst_44 = arith.constant dense<0.000000e+00> : vector<8x384xf32>
    %54 = tpu.matmul %51, %53, %cst_44 {dimension_numbers = #tpu.dot_dimension_numbers<[1], [0], [0], [1], [0, 0, 1, 1], [], []>} : vector<8x8xbf16>, vector<8x384xbf16>, vector<8x384xf32> -> vector<8x384xf32>
    %55 = arith.addf %49, %54 : vector<8x384xf32>
    %c9 = arith.constant 9 : index
    %c0_45 = arith.constant 0 : index
    %c0_46 = arith.constant 0 : index
    %56 = vector.load %arg3[%c9, %c0_45, %c0_46] : memref<18x8x8xbf16, #tpu.memory_space<vmem>>, vector<1x8x8xbf16>
    %57 = vector.shape_cast %56 : vector<1x8x8xbf16> to vector<8x8xbf16>
    %c0_47 = arith.constant 0 : index
    %c0_48 = arith.constant 0 : index
    %c0_49 = arith.constant 0 : index
    %58 = vector.load %arg2[%c0_47, %c0_48, %c0_49] : memref<1x8x640xbf16, #tpu.memory_space<vmem>>, vector<1x8x384xbf16>
    %59 = vector.shape_cast %58 : vector<1x8x384xbf16> to vector<8x384xbf16>
    %cst_50 = arith.constant dense<0.000000e+00> : vector<8x384xf32>
    %60 = tpu.matmul %57, %59, %cst_50 {dimension_numbers = #tpu.dot_dimension_numbers<[1], [0], [0], [1], [0, 0, 1, 1], [], []>} : vector<8x8xbf16>, vector<8x384xbf16>, vector<8x384xf32> -> vector<8x384xf32>
    %61 = arith.addf %55, %60 : vector<8x384xf32>
    %c10 = arith.constant 10 : index
    %c0_51 = arith.constant 0 : index
    %c0_52 = arith.constant 0 : index
    %62 = vector.load %arg3[%c10, %c0_51, %c0_52] : memref<18x8x8xbf16, #tpu.memory_space<vmem>>, vector<1x8x8xbf16>
    %63 = vector.shape_cast %62 : vector<1x8x8xbf16> to vector<8x8xbf16>
    %c0_53 = arith.constant 0 : index
    %c0_54 = arith.constant 0 : index
    %c4_55 = arith.constant 4 : index
    %64 = vector.load %arg2[%c0_53, %c0_54, %c4_55] : memref<1x8x640xbf16, #tpu.memory_space<vmem>>, vector<1x8x384xbf16>
    %65 = vector.shape_cast %64 : vector<1x8x384xbf16> to vector<8x384xbf16>
    %cst_56 = arith.constant dense<0.000000e+00> : vector<8x384xf32>
    %66 = tpu.matmul %63, %65, %cst_56 {dimension_numbers = #tpu.dot_dimension_numbers<[1], [0], [0], [1], [0, 0, 1, 1], [], []>} : vector<8x8xbf16>, vector<8x384xbf16>, vector<8x384xf32> -> vector<8x384xf32>
    %67 = arith.addf %61, %66 : vector<8x384xf32>
    %c11 = arith.constant 11 : index
    %c0_57 = arith.constant 0 : index
    %c0_58 = arith.constant 0 : index
    %68 = vector.load %arg3[%c11, %c0_57, %c0_58] : memref<18x8x8xbf16, #tpu.memory_space<vmem>>, vector<1x8x8xbf16>
    %69 = vector.shape_cast %68 : vector<1x8x8xbf16> to vector<8x8xbf16>
    %c0_59 = arith.constant 0 : index
    %c0_60 = arith.constant 0 : index
    %c8_61 = arith.constant 8 : index
    %70 = vector.load %arg2[%c0_59, %c0_60, %c8_61] : memref<1x8x640xbf16, #tpu.memory_space<vmem>>, vector<1x8x384xbf16>
    %71 = vector.shape_cast %70 : vector<1x8x384xbf16> to vector<8x384xbf16>
    %cst_62 = arith.constant dense<0.000000e+00> : vector<8x384xf32>
    %72 = tpu.matmul %69, %71, %cst_62 {dimension_numbers = #tpu.dot_dimension_numbers<[1], [0], [0], [1], [0, 0, 1, 1], [], []>} : vector<8x8xbf16>, vector<8x384xbf16>, vector<8x384xf32> -> vector<8x384xf32>
    %73 = arith.addf %67, %72 : vector<8x384xf32>
    %c12 = arith.constant 12 : index
    %c0_63 = arith.constant 0 : index
    %c0_64 = arith.constant 0 : index
    %74 = vector.load %arg3[%c12, %c0_63, %c0_64] : memref<18x8x8xbf16, #tpu.memory_space<vmem>>, vector<1x8x8xbf16>
    %75 = vector.shape_cast %74 : vector<1x8x8xbf16> to vector<8x8xbf16>
    %c0_65 = arith.constant 0 : index
    %c0_66 = arith.constant 0 : index
    %c96 = arith.constant 96 : index
    %76 = vector.load %arg2[%c0_65, %c0_66, %c96] : memref<1x8x640xbf16, #tpu.memory_space<vmem>>, vector<1x8x384xbf16>
    %77 = vector.shape_cast %76 : vector<1x8x384xbf16> to vector<8x384xbf16>
    %cst_67 = arith.constant dense<0.000000e+00> : vector<8x384xf32>
    %78 = tpu.matmul %75, %77, %cst_67 {dimension_numbers = #tpu.dot_dimension_numbers<[1], [0], [0], [1], [0, 0, 1, 1], [], []>} : vector<8x8xbf16>, vector<8x384xbf16>, vector<8x384xf32> -> vector<8x384xf32>
    %79 = arith.addf %73, %78 : vector<8x384xf32>
    %c13 = arith.constant 13 : index
    %c0_68 = arith.constant 0 : index
    %c0_69 = arith.constant 0 : index
    %80 = vector.load %arg3[%c13, %c0_68, %c0_69] : memref<18x8x8xbf16, #tpu.memory_space<vmem>>, vector<1x8x8xbf16>
    %81 = vector.shape_cast %80 : vector<1x8x8xbf16> to vector<8x8xbf16>
    %c0_70 = arith.constant 0 : index
    %c0_71 = arith.constant 0 : index
    %c100_72 = arith.constant 100 : index
    %82 = vector.load %arg2[%c0_70, %c0_71, %c100_72] : memref<1x8x640xbf16, #tpu.memory_space<vmem>>, vector<1x8x384xbf16>
    %83 = vector.shape_cast %82 : vector<1x8x384xbf16> to vector<8x384xbf16>
    %cst_73 = arith.constant dense<0.000000e+00> : vector<8x384xf32>
    %84 = tpu.matmul %81, %83, %cst_73 {dimension_numbers = #tpu.dot_dimension_numbers<[1], [0], [0], [1], [0, 0, 1, 1], [], []>} : vector<8x8xbf16>, vector<8x384xbf16>, vector<8x384xf32> -> vector<8x384xf32>
    %85 = arith.addf %79, %84 : vector<8x384xf32>
    %c14 = arith.constant 14 : index
    %c0_74 = arith.constant 0 : index
    %c0_75 = arith.constant 0 : index
    %86 = vector.load %arg3[%c14, %c0_74, %c0_75] : memref<18x8x8xbf16, #tpu.memory_space<vmem>>, vector<1x8x8xbf16>
    %87 = vector.shape_cast %86 : vector<1x8x8xbf16> to vector<8x8xbf16>
    %c0_76 = arith.constant 0 : index
    %c0_77 = arith.constant 0 : index
    %c104 = arith.constant 104 : index
    %88 = vector.load %arg2[%c0_76, %c0_77, %c104] : memref<1x8x640xbf16, #tpu.memory_space<vmem>>, vector<1x8x384xbf16>
    %89 = vector.shape_cast %88 : vector<1x8x384xbf16> to vector<8x384xbf16>
    %cst_78 = arith.constant dense<0.000000e+00> : vector<8x384xf32>
    %90 = tpu.matmul %87, %89, %cst_78 {dimension_numbers = #tpu.dot_dimension_numbers<[1], [0], [0], [1], [0, 0, 1, 1], [], []>} : vector<8x8xbf16>, vector<8x384xbf16>, vector<8x384xf32> -> vector<8x384xf32>
    %91 = arith.addf %85, %90 : vector<8x384xf32>
    %c15 = arith.constant 15 : index
    %c0_79 = arith.constant 0 : index
    %c0_80 = arith.constant 0 : index
    %92 = vector.load %arg3[%c15, %c0_79, %c0_80] : memref<18x8x8xbf16, #tpu.memory_space<vmem>>, vector<1x8x8xbf16>
    %93 = vector.shape_cast %92 : vector<1x8x8xbf16> to vector<8x8xbf16>
    %c0_81 = arith.constant 0 : index
    %c0_82 = arith.constant 0 : index
    %c192 = arith.constant 192 : index
    %94 = vector.load %arg2[%c0_81, %c0_82, %c192] : memref<1x8x640xbf16, #tpu.memory_space<vmem>>, vector<1x8x384xbf16>
    %95 = vector.shape_cast %94 : vector<1x8x384xbf16> to vector<8x384xbf16>
    %cst_83 = arith.constant dense<0.000000e+00> : vector<8x384xf32>
    %96 = tpu.matmul %93, %95, %cst_83 {dimension_numbers = #tpu.dot_dimension_numbers<[1], [0], [0], [1], [0, 0, 1, 1], [], []>} : vector<8x8xbf16>, vector<8x384xbf16>, vector<8x384xf32> -> vector<8x384xf32>
    %97 = arith.addf %91, %96 : vector<8x384xf32>
    %c16 = arith.constant 16 : index
    %c0_84 = arith.constant 0 : index
    %c0_85 = arith.constant 0 : index
    %98 = vector.load %arg3[%c16, %c0_84, %c0_85] : memref<18x8x8xbf16, #tpu.memory_space<vmem>>, vector<1x8x8xbf16>
    %99 = vector.shape_cast %98 : vector<1x8x8xbf16> to vector<8x8xbf16>
    %c0_86 = arith.constant 0 : index
    %c0_87 = arith.constant 0 : index
    %c196 = arith.constant 196 : index
    %100 = vector.load %arg2[%c0_86, %c0_87, %c196] : memref<1x8x640xbf16, #tpu.memory_space<vmem>>, vector<1x8x384xbf16>
    %101 = vector.shape_cast %100 : vector<1x8x384xbf16> to vector<8x384xbf16>
    %cst_88 = arith.constant dense<0.000000e+00> : vector<8x384xf32>
    %102 = tpu.matmul %99, %101, %cst_88 {dimension_numbers = #tpu.dot_dimension_numbers<[1], [0], [0], [1], [0, 0, 1, 1], [], []>} : vector<8x8xbf16>, vector<8x384xbf16>, vector<8x384xf32> -> vector<8x384xf32>
    %103 = arith.addf %97, %102 : vector<8x384xf32>
    %c17 = arith.constant 17 : index
    %c0_89 = arith.constant 0 : index
    %c0_90 = arith.constant 0 : index
    %104 = vector.load %arg3[%c17, %c0_89, %c0_90] : memref<18x8x8xbf16, #tpu.memory_space<vmem>>, vector<1x8x8xbf16>
    %105 = vector.shape_cast %104 : vector<1x8x8xbf16> to vector<8x8xbf16>
    %c0_91 = arith.constant 0 : index
    %c0_92 = arith.constant 0 : index
    %c200 = arith.constant 200 : index
    %106 = vector.load %arg2[%c0_91, %c0_92, %c200] : memref<1x8x640xbf16, #tpu.memory_space<vmem>>, vector<1x8x384xbf16>
    %107 = vector.shape_cast %106 : vector<1x8x384xbf16> to vector<8x384xbf16>
    %cst_93 = arith.constant dense<0.000000e+00> : vector<8x384xf32>
    %108 = tpu.matmul %105, %107, %cst_93 {dimension_numbers = #tpu.dot_dimension_numbers<[1], [0], [0], [1], [0, 0, 1, 1], [], []>} : vector<8x8xbf16>, vector<8x384xbf16>, vector<8x384xf32> -> vector<8x384xf32>
    %109 = arith.addf %103, %108 : vector<8x384xf32>
    %c0_94 = arith.constant 0 : index
    %c0_95 = arith.constant 0 : index
    %110 = vector.load %arg6[%c0_94, %c0_95] : memref<8x384xf32, #tpu.memory_space<vmem>>, vector<8x384xf32>
    %111 = arith.addf %110, %109 : vector<8x384xf32>
    %c0_96 = arith.constant 0 : index
    %c0_97 = arith.constant 0 : index
    %112 = vector.load %arg6[%c0_96, %c0_97] : memref<8x384xf32, #tpu.memory_space<vmem>>, vector<8x384xf32>
    tpu.vector_store %arg6[%c0_96, %c0_97], %111 {strides = array<i32>} : memref<8x384xf32, #tpu.memory_space<vmem>>, vector<8x384xf32>,
    %c0_i32_98 = arith.constant 0 : i32
    %113 = arith.cmpi eq, %arg1, %c0_i32_98 : i32
    %114 = arith.extui %113 : i1 to i32
    %c0_i32_99 = arith.constant 0 : i32
    %115 = arith.cmpi ne, %114, %c0_i32_99 : i32
    scf.if %115 {
      %c0_100 = arith.constant 0 : index
      %c0_101 = arith.constant 0 : index
      %116 = vector.load %arg6[%c0_100, %c0_101] : memref<8x384xf32, #tpu.memory_space<vmem>>, vector<8x384xf32>
      %c0_102 = arith.constant 0 : index
      %c0_103 = arith.constant 0 : index
      %117 = vector.load %arg4[%c0_102, %c0_103] : memref<8x1xf32, #tpu.memory_space<vmem>>, vector<8x1xf32>
      %118 = vector.broadcast %117 : vector<8x1xf32> to vector<8x384xf32>
      %119 = arith.addf %116, %118 : vector<8x384xf32>
      %c0_104 = arith.constant 0 : index
      %c0_105 = arith.constant 0 : index
      %c0_106 = arith.constant 0 : index
      %120 = vector.load %arg5[%c0_104, %c0_105, %c0_106] : memref<1x8x384xf32, #tpu.memory_space<vmem>>, vector<1x8x384xf32>
      %121 = vector.shape_cast %120 : vector<1x8x384xf32> to vector<8x384xf32>
      %122 = vector.shape_cast %119 : vector<8x384xf32> to vector<1x8x384xf32>
      tpu.vector_store %arg5[%c0_104, %c0_105, %c0_106], %122 {strides = array<i32>} : memref<1x8x384xf32, #tpu.memory_space<vmem>>, vector<1x8x384xf32>,
    } else {
    }
    return
  }
  func.func @transform_0(%arg0: i32, %arg1: i32) -> (i32, i32, i32) {
    %c0_i32 = arith.constant 0 : i32
    %c0_i32_0 = arith.constant 0 : i32
    return %arg0, %arg1, %c0_i32 : i32, i32, i32
  }
  func.func @transform_1(%arg0: i32, %arg1: i32) -> (i32, i32, i32) {
    %c0_i32 = arith.constant 0 : i32
    %c0_i32_0 = arith.constant 0 : i32
    %c0_i32_1 = arith.constant 0 : i32
    return %c0_i32, %c0_i32_0, %arg1 : i32, i32, i32
  }
  func.func @transform_2(%arg0: i32, %arg1: i32) -> (i32, i32) {
    %c0_i32 = arith.constant 0 : i32
    %c0_i32_0 = arith.constant 0 : i32
    %c0_i32_1 = arith.constant 0 : i32
    return %c0_i32, %c0_i32_0 : i32, i32
  }
  func.func @transform_3(%arg0: i32, %arg1: i32) -> (i32, i32, i32) {
    %c0_i32 = arith.constant 0 : i32
    %c0_i32_0 = arith.constant 0 : i32
    %c0_i32_1 = arith.constant 0 : i32
    return %arg0, %c0_i32, %c0_i32_0 : i32, i32, i32
  }
}

</mosaic_0001>

<bundles_post_ra>
// kernel: tpu_custom_call.1
= control target key start
LH: loop header
LB: loop body
LE: loop exit
PB: predicated region body
PF: predicated region fallthrough
CT: control target
= control target key end

     0   :  { %8 = vsyncpa [#allocation4], 0  ;;  %s3208_s0 = inlined_call_operand.vmem [shape: bf16[2,8,640], index: 0, kind: input, shape index: {}]   ;;  %s3209_s1 = inlined_call_operand.vmem [shape: bf16[18,8,8], index: 1, kind: input, shape index: {}]   ;;  %s3210_s2 = inlined_call_operand.vmem [shape: f32[8,1], index: 2, kind: input, shape index: {}]   ;;  %s3211_s3 = inlined_call_operand.hbm [shape: f32[2,8,384], index: 3, kind: output, shape index: {}]  }
   0x1   :  { %10 = vsyncpa [#allocation4 + $0x1], 0  ;;  %s2770_s12 = smov 0   ;;  %s2772_s13 = smov 0  }
   0x2   :  { %s2774_s14 = smov 0   ;;  %s2776_s15 = smov 0  }
   0x3   :  { %s2778_s16 = smov 0   ;;  %s2780_s17 = smov 0  }
   0x4 LB: > { %s2329_s18 = sadd.s32 4294967295, %s2728_s17   ;;  %s2330_s19 = sadd.s32 4294967294, %s2728_s17   ;;  %s2728_s17 = sphi %s2780_s17, %s16_s17   ;;  %s2724_s16 = sphi %s2778_s16, %s3218_s16   ;;  %s2720_s15 = sphi %s2776_s15, %s3217_s15   ;;  %s2716_s14 = sphi %s2774_s14, %s3216_s14   ;;  %s2712_s13 = sphi %s2772_s13, %s3215_s13   ;;  %s2708_s12 = sphi %s2770_s12, %s3214_s12  }
   0x5   : > { %s28_s20 = sadd.s32 1, %s2724_s16  ;;  %s110_s21 = sadd.s32 1, %s2716_s14 }
   0x6   : > { %p30_p0 = scmp.ge.s32.totalorder %s28_s20, 2  ;;  %p120_p1 = scmp.ne.s32.totalorder %s2716_s14, %s2712_s13 }
   0x7   : > { %p121_p2 = scmp.eq.s32.totalorder %s2329_s18, 1  ;;  %p126_p3 = scmp.ne.s32.totalorder %s2712_s13, %s2708_s12 }
   0x8   : > { %s3220_s20 = smov (%p30_p0, %s28_s20), 0  ;;  %p127_p5 = scmp.eq.s32.totalorder %s2330_s19, 1 }
   0x9   : > { %p2810_p4 = por %p121_p2, %p120_p1  ;;  %s107_s23 = ssub.s32 %s2724_s16, %s3220_s20 }
   0xa   : > { %p2334_p6 = scmp.ge.s32.totalorder %s2728_s17, 1  ;;  %p108_p7 = scmp.eq.s32.totalorder %s107_s23, 0 }
   0xb   : > { %p2817_p8 = por %p127_p5, %p126_p3  ;;  %p167_p9 = scmp.lt.s32.totalorder %s2728_s17, 3 }
   0xc   : > { %s2823_s25 = scalar_select %p108_p7, %s2716_s14, %s110_s21  }
   0xd   : > { %p168_p10 = pnand %p2334_p6, %p167_p9 }
   0xe   : > { %p199_p11 = scmp.lt.s32.totalorder (!%p168_p10), %s2720_s15, 1  ;;  %s2733_s4 = smov (!%p168_p10), 76  }
   0xf   : > { %171 = sbr.rel (%p168_p10) target bundleno = 500 (0x1f4), region = 32  ;;  %s2734_s5 = smov (!%p168_p10), 78  }
  0x10   : > { %s2735_s6 = smov (!%p168_p10), 74   ;;  %s2736_s7 = smov (!%p168_p10), 30  }
  0x11   : > { %s2737_s8 = smov (!%p168_p10), 28   ;;  %s2738_s9 = smov (!%p168_p10), 26  }
  0x12   : > { %s2739_s10 = smov (!%p168_p10), 110   ;;  %s2740_s11 = smov (!%p168_p10), 108  }
  0x13   : > { %s2741_s18 = smov (!%p168_p10), 106   ;;  %s2742_s19 = smov (!%p168_p10), 124  }
  0x14   : > { %v2730_v0 = vmov 0.0   ;;  %s200_s26 = scalar_select %p199_p11, %s2720_s15, 1  ;;  %v2731_v1 = vmov 0   ;;  %vm2732_vm0 = vmmov 0   ;;  %vm243_vm1 = vcmask 621568  }
  0x15   : > { %2457 = vmatprep.subr.bf16.mxu1 %v2730_v0  ;;  %293 = vmatprep.mubr.bf16.mxu0 %v2731_v1  ;;  %s2743_s21 = smov 120   ;;  %s2744_s23 = smov 32   ;;  %vm251_vm2 = vcmask 1043456   ;;  %v2336_v23 = vld [vmem:[%s3209_s1 + $0x4] sm:$0xf]  ;;  %vm247_vm3 = vcmask 64512  }
  0x16   : > { %s2566_s27 = smul.u32 20, %s200_s26  ;;  %2459 = vmatprep.mubr.msk.bf16.mxu1 %vm2732_vm0, %v2730_v0  ;;  %2642 = vset.pattern.permute.xlu0 %v2731_v1  ;;  %s2745_s26 = smov 24   ;;  %vm350_vm4 = vcmask 637952   ;;  %v220_v33 = vld [vmem:[%s3209_s1] sm:$0xf]  ;;  %vm457_vm5 = vcmask 605184  }
  0x17   : > { %s2747_s28 = smov 60   ;;  %s2748_s29 = smov 56   ;;  %v2347_v43 = vld [vmem:[%s3209_s1 + $0x8] sm:$0xf]  ;;  %vm567_vm6 = vcmask 244736   ;;  %vm677_vm7 = vcmask 228352  }
  0x18   : > { %s2834_s30 = scalar_lea.vmem %s3208_s0, %s2566_s27  ;;  %s2746_s27 = smov 64   ;;  %v2351_v53 = vld [vmem:[%s3209_s1 + $0xc] sm:$0xf]  ;;  %v2355_v63 = vld [vmem:[%s3209_s1 + $0x10] sm:$0xf]  ;;  %vm787_vm8 = vcmask 211968  }
  0x19   : > { %v222_v2 = vld [vmem:[%s2834_s30 + $0x8] sm:$0xff]  ;;  %v221_v3 = vld [vmem:[%s2834_s30] sm:$0xff]  ;;  %vm909_vm9 = vcmask 900096   ;;  %vm1019_vm10 = vcmask 883712   ;;  %vm1129_vm11 = vcmask 867328   ;;  %vm1347_vm12 = vcmask 1014784  }
  0x1a   : > { %v2839_v4 = vcombine.low %v222_v2, %v222_v2  ;;  %v2841_v5 = vcombine.low %v221_v3, %v221_v3  ;;  %v2845_v6 = vcombine.high %v222_v2, %v222_v2  ;;  %v2847_v7 = vcombine.high %v221_v3, %v221_v3  ;;  %v889_v8 = vld [vmem:[%s2834_s30 + $0x4] sm:$0xff]  ;;  %v890_v11 = vld [vmem:[%s2834_s30 + $0xc] sm:$0xff] }
  0x1b   : > { %v2872_v9 = vcombine.high %v889_v8, %v889_v8  ;;  %v2364_v10 = vcombine.low %v889_v8, %v889_v8  ;;  %v2876_v12 = vcombine.high %v890_v11, %v890_v11  ;;  %v2878_v13 = vcombine.low %v890_v11, %v890_v11 }
  0x1c   : > { %239 = vrot.lane.b32.xlu1 %v2839_v4, %s2733_s4  ;;  %235 = vrot.lane.b32.xlu0 %v2841_v5, %s2733_s4  ;;  %vm1457_vm13 = vcmask 982016   ;;  %vm1567_vm14 = vcmask 261120   ;;  %vm1766_vm15 = vcmask 195584  }
  0x20   : > { %241 = vrot.lane.b32.xlu1 %v2845_v6, %s2733_s4  ;;  %237 = vrot.lane.b32.xlu0 %v2847_v7, %s2733_s4 }
  0x24   : > { %344 = vrot.lane.b32.xlu1 %v2847_v7, %s2734_s5  ;;  %342 = vrot.lane.b32.xlu0 %v2841_v5, %s2734_s5 }
  0x28   : > { %348 = vrot.lane.b32.xlu1 %v2845_v6, %s2734_s5  ;;  %346 = vrot.lane.b32.xlu0 %v2839_v4, %s2734_s5 }
  0x2c   : > { %451 = vrot.lane.b32.xlu1 %v2847_v7, %s2735_s6  ;;  %449 = vrot.lane.b32.xlu0 %v2841_v5, %s2735_s6 }
  0x30   : > { %455 = vrot.lane.b32.xlu1 %v2845_v6, %s2735_s6  ;;  %453 = vrot.lane.b32.xlu0 %v2839_v4, %s2735_s6 }
  0x34   : > { %561 = vrot.lane.b32.xlu1 %v2847_v7, %s2736_s7  ;;  %559 = vrot.lane.b32.xlu0 %v2841_v5, %s2736_s7 }
  0x38   : > { %565 = vrot.lane.b32.xlu1 %v2845_v6, %s2736_s7  ;;  %563 = vrot.lane.b32.xlu0 %v2839_v4, %s2736_s7 }
  0x3c   : > { %671 = vrot.lane.b32.xlu1 %v2847_v7, %s2737_s8  ;;  %669 = vrot.lane.b32.xlu0 %v2841_v5, %s2737_s8 }
  0x40   : > { %675 = vrot.lane.b32.xlu1 %v2845_v6, %s2737_s8  ;;  %673 = vrot.lane.b32.xlu0 %v2839_v4, %s2737_s8  ;;  %s196_s8 = sand.u32 1, %s2712_s13  }
  0x44   : > { %781 = vrot.lane.b32.xlu1 %v2847_v7, %s2738_s9  ;;  %779 = vrot.lane.b32.xlu0 %v2841_v5, %s2738_s9 }
  0x48   : > { %785 = vrot.lane.b32.xlu1 %v2845_v6, %s2738_s9  ;;  %783 = vrot.lane.b32.xlu0 %v2839_v4, %s2738_s9  ;;  %s2565_s9 = smul.u32 24, %s196_s8 }
  0x4c   : > { %903 = vrot.lane.b32.xlu1 %v2872_v9, %s2739_s10  ;;  %901 = vrot.lane.b32.xlu0 %v2364_v10, %s2739_s10 }
  0x50   : > { %907 = vrot.lane.b32.xlu1 %v2876_v12, %s2739_s10  ;;  %905 = vrot.lane.b32.xlu0 %v2878_v13, %s2739_s10  ;;  %s2567_s10 = smul.u32 384, %s2720_s15  ;;  %s2224_s15 = scalar_lea.sflag [#allocation4], %s196_s8 }
  0x54   : > { %1013 = vrot.lane.b32.xlu1 %v2872_v9, %s2740_s11  ;;  %1011 = vrot.lane.b32.xlu0 %v2364_v10, %s2740_s11 }
  0x58   : > { %1017 = vrot.lane.b32.xlu1 %v2876_v12, %s2740_s11  ;;  %1015 = vrot.lane.b32.xlu0 %v2878_v13, %s2740_s11  ;;  %s198_s11 = scalar_lea.vmem [#allocation3], %s2565_s9 }
  0x5c   : > { %1123 = vrot.lane.b32.xlu1 %v2872_v9, %s2741_s18  ;;  %1121 = vrot.lane.b32.xlu0 %v2364_v10, %s2741_s18 }
  0x60   : > { %1127 = vrot.lane.b32.xlu1 %v2876_v12, %s2741_s18  ;;  %1125 = vrot.lane.b32.xlu0 %v2878_v13, %s2741_s18  ;;  %s2238_s18 = sshll.u32 %s198_s11, 4  ;;  %s3162_s18 = int_to_ptr.vmem [resolvable:$true] %s2238_s18 }
  0x64   : > { %1339 = vrot.lane.b32.xlu0 %v2841_v5, %s2742_s19  ;;  %1341 = vrot.lane.b32.xlu1 %v2847_v7, %s2742_s19 }
  0x68   : > { %1343 = vrot.lane.b32.xlu0 %v2839_v4, %s2742_s19  ;;  %1345 = vrot.lane.b32.xlu1 %v2845_v6, %s2742_s19 }
  0x6c   : > { %1449 = vrot.lane.b32.xlu0 %v2841_v5, %s2743_s21  ;;  %1451 = vrot.lane.b32.xlu1 %v2847_v7, %s2743_s21 }
  0x70   : > { %1453 = vrot.lane.b32.xlu0 %v2839_v4, %s2743_s21  ;;  %1455 = vrot.lane.b32.xlu1 %v2845_v6, %s2743_s21 }
  0x74   : > { %1559 = vrot.lane.b32.xlu0 %v2841_v5, %s2744_s23  ;;  %1561 = vrot.lane.b32.xlu1 %v2847_v7, %s2744_s23 }
  0x78   : > { %1563 = vrot.lane.b32.xlu0 %v2839_v4, %s2744_s23  ;;  %1565 = vrot.lane.b32.xlu1 %v2845_v6, %s2744_s23  ;;  %s3160_s23 = scalar_lea.hbm %s3211_s3, %s2567_s10 }
  0x7c   : > { %1758 = vrot.lane.b32.xlu0 %v2841_v5, %s2745_s26  ;;  %1760 = vrot.lane.b32.xlu1 %v2847_v7, %s2745_s26 }
  0x80   : > { %1762 = vrot.lane.b32.xlu0 %v2839_v4, %s2745_s26  ;;  %1764 = vrot.lane.b32.xlu1 %v2845_v6, %s2745_s26  ;;  %s2652_s26 = scalar_lea.vmem %s3162_s18, 384 }
  0x81   : > { %p2653_p12 = scmp.ne.s32.totalorder %s3162_s18, %s2652_s26 }
  0x83   : > { %p2654_p13 = pnand %p2653_p12, %p2810_p4 }
  0x84   : > { %1868 = vrot.lane.b32.xlu0 %v2364_v10, %s2746_s27  ;;  %1870 = vrot.lane.b32.xlu1 %v2872_v9, %s2746_s27 }
  0x85   : > { %p2655_p0 = pneg %p2654_p13 }
  0x88   : > { %1872 = vrot.lane.b32.xlu0 %v2878_v13, %s2746_s27  ;;  %1874 = vrot.lane.b32.xlu1 %v2876_v12, %s2746_s27  ;;  %s2749_s27 = smov [#allocation3]  }
  0x8c   : > { %1978 = vrot.lane.b32.xlu0 %v2364_v10, %s2747_s28  ;;  %1980 = vrot.lane.b32.xlu1 %v2872_v9, %s2747_s28 }
  0x8e   : > { %v240_v14 = vpop.permute.xlu1 %239  ;;  %v236_v15 = vpop.permute.xlu0 %235 }
  0x90   : > { %1982 = vrot.lane.b32.xlu0 %v2878_v13, %s2747_s28  ;;  %1984 = vrot.lane.b32.xlu1 %v2876_v12, %s2747_s28  ;;  %s2656_s28 = sshll.u32 %s2749_s27, 4  ;;  %s2657_s28 = int_to_ptr.vmem [resolvable:$false] %s2656_s28 }
  0x91   : > { %p2659_p1 = scmp.lt.s32.totalorder %s3162_s18, %s2657_s28 }
  0x92   : > { %v242_v16 = vpop.permute.xlu1 %241  ;;  %v238_v17 = vpop.permute.xlu0 %237 }
  0x93   : > { %v245_v18 = vsel %vm243_vm1, %v238_v17, %v240_v14  ;;  %v244_v19 = vsel %vm243_vm1, %v236_v15, %v238_v17  ;;  %v246_v20 = vsel %vm243_vm1, %v240_v14, %v242_v16  ;;  %vm1876_vm1 = vcmask 523264  }
  0x94   : > { %2341 = vmatprep.subr.msk.bf16.mxu0 %vm251_vm2, %v245_v18  ;;  %v253_v21 = vsel %vm251_vm2, %v244_v19, 0  ;;  %v259_v22 = vsel %vm251_vm2, %v246_v20, 0  ;;  %2088 = vrot.lane.b32.xlu0 %v2364_v10, %s2748_s29 }
  0x95   : > { %276 = vmatpush1.bf16.msra.mxu0 %v253_v21  ;;  %2458 = vmatpush3.bf16.msra.mxu1 %v259_v22 }
  0x96   : > { %v345_v24 = vpop.permute.xlu1 %344  ;;  %v343_v25 = vpop.permute.xlu0 %342  ;;  %2463 = vmatprep.subr.bf16.mxu1 %v2730_v0  ;;  %2090 = vrot.lane.b32.xlu1 %v2872_v9, %s2748_s29 }
  0x97   : > { %v351_v26 = vsel %vm350_vm4, %v343_v25, %v345_v24 }
  0x98   : > { %2460 = vmatmul.mubr.msk.bf16.vlgmr.msra.gmra.mxu1 %vm247_vm3, %v2336_v23  ;;  %2342 = vmatmul.mubr.msk.bf16.vlgmr.msra.gmra.mxu0 %vm247_vm3, %v2336_v23  ;;  %v358_v31 = vsel %vm251_vm2, %v351_v26, 0  ;;  %v2363_v23 = vld [vmem:[%s3209_s1 + $0x18] sm:$0xf] }
  0x99   : > { %398 = vmatprep.mubr.bf16.mxu0 %v2731_v1  ;;  %2465 = vmatprep.mubr.msk.bf16.mxu1 %vm2732_vm0, %v2730_v0 }
  0x9a   : > { %v349_v27 = vpop.permute.xlu1 %348  ;;  %v347_v28 = vpop.permute.xlu0 %346  ;;  %2092 = vrot.lane.b32.xlu0 %v2878_v13, %s2748_s29  ;;  %2094 = vrot.lane.b32.xlu1 %v2876_v12, %s2748_s29  ;;  %v2359_v13 = vld [vmem:[%s3209_s1 + $0x14] sm:$0xf]  ;;  %s2658_s29 = scalar_lea.vmem %s2657_s28, 768 }
  0x9b   : > { %v352_v29 = vsel %vm350_vm4, %v345_v24, %v347_v28  ;;  %v353_v30 = vsel %vm350_vm4, %v347_v28, %v349_v27  ;;  %vm1986_vm4 = vcmask 490496   ;;  %p2660_p2 = scmp.lt.s32.totalorder %s2658_s29, %s2652_s26 }
  0x9c   : > { %v364_v32 = vsel %vm251_vm2, %v353_v30, 0  ;;  %2344 = vmatprep.subr.msk.bf16.mxu0 %vm251_vm2, %v352_v29 }
  0x9d   : > { %381 = vmatpush1.bf16.msra.mxu0 %v358_v31  ;;  %2464 = vmatpush3.bf16.msra.mxu1 %v364_v32  ;;  %p2661_p3 = por %p2660_p2, %p2659_p1 }
  0x9e   : > { %v452_v34 = vpop.permute.xlu1 %451  ;;  %v450_v35 = vpop.permute.xlu0 %449  ;;  %2469 = vmatprep.subr.bf16.mxu1 %v2730_v0 }
  0x9f   : > { %v458_v36 = vsel %vm457_vm5, %v450_v35, %v452_v34  ;;  %p2662_p5 = pnand %p2661_p3, %p2655_p0 }
  0xa0   : > { %2345 = vmatmul.mubr.msk.bf16.vlgmr.msra.gmra.mxu0 %vm247_vm3, %v220_v33  ;;  %2466 = vmatmul.mubr.msk.bf16.vlgmr.msra.gmra.mxu1 %vm247_vm3, %v220_v33  ;;  %v465_v41 = vsel %vm251_vm2, %v458_v36, 0  ;;  %v2371_v33 = vld [vmem:[%s3209_s1 + $0x1c] sm:$0xf] }
  0xa1   : > { %505 = vmatprep.mubr.bf16.mxu0 %v2731_v1  ;;  %2471 = vmatprep.mubr.msk.bf16.mxu1 %vm2732_vm0, %v2730_v0 }
  0xa2   : > { %v456_v37 = vpop.permute.xlu1 %455  ;;  %v454_v38 = vpop.permute.xlu0 %453 }
  0xa3   : > { %v459_v39 = vsel %vm457_vm5, %v452_v34, %v454_v38  ;;  %v460_v40 = vsel %vm457_vm5, %v454_v38, %v456_v37  ;;  %vm2096_vm5 = vcmask 457728  }
  0xa4   : > { %v471_v42 = vsel %vm251_vm2, %v460_v40, 0  ;;  %2348 = vmatprep.subr.msk.bf16.mxu0 %vm251_vm2, %v459_v39  ;;  %v2651_v39 = vld [vmem:[%s2834_s30 + $0x8] ss:$0 sps:$4 sm:$0xff]  }
  0xa5   : > { %488 = vmatpush1.bf16.msra.mxu0 %v465_v41  ;;  %2470 = vmatpush3.bf16.msra.mxu1 %v471_v42 }
  0xa6   : > { %v562_v44 = vpop.permute.xlu1 %561  ;;  %v560_v45 = vpop.permute.xlu0 %559  ;;  %2475 = vmatprep.subr.bf16.mxu1 %v2730_v0 }
  0xa7   : > { %v568_v46 = vsel %vm567_vm6, %v560_v45, %v562_v44 }
  0xa8   : > { %2349 = vmatmul.mubr.msk.bf16.vlgmr.msra.gmra.mxu0 %vm247_vm3, %v2347_v43  ;;  %2472 = vmatmul.mubr.msk.bf16.vlgmr.msra.gmra.mxu1 %vm247_vm3, %v2347_v43  ;;  %v575_v51 = vsel %vm251_vm2, %v568_v46, 0 }
  0xa9   : > { %615 = vmatprep.mubr.bf16.mxu0 %v2731_v1  ;;  %2477 = vmatprep.mubr.msk.bf16.mxu1 %vm2732_vm0, %v2730_v0 }
  0xaa   : > { %v566_v47 = vpop.permute.xlu1 %565  ;;  %v564_v48 = vpop.permute.xlu0 %563 }
  0xab   : > { %v569_v49 = vsel %vm567_vm6, %v562_v44, %v564_v48  ;;  %v570_v50 = vsel %vm567_vm6, %v564_v48, %v566_v47  ;;  %v2375_v44 = vld [vmem:[%s3209_s1 + $0x20] sm:$0xf]  ;;  %v1245_v47 = vsel %vm251_vm2, %v2841_v5, 0  ;;  %v1251_v48 = vsel %vm251_vm2, %v2651_v39, 0  ;;  %v2379_v5 = vld [vmem:[%s3209_s1 + $0x24] sm:$0xf] }
  0xac   : > { %v581_v52 = vsel %vm251_vm2, %v570_v50, 0  ;;  %2352 = vmatprep.subr.msk.bf16.mxu0 %vm251_vm2, %v569_v49 }
  0xad   : > { %598 = vmatpush1.bf16.msra.mxu0 %v575_v51  ;;  %2476 = vmatpush3.bf16.msra.mxu1 %v581_v52 }
  0xae   : > { %v672_v54 = vpop.permute.xlu1 %671  ;;  %v670_v55 = vpop.permute.xlu0 %669  ;;  %2481 = vmatprep.subr.bf16.mxu1 %v2730_v0 }
  0xaf   : > { %v678_v56 = vsel %vm677_vm7, %v670_v55, %v672_v54 }
  0xb0   : > { %2353 = vmatmul.mubr.msk.bf16.vlgmr.msra.gmra.mxu0 %vm247_vm3, %v2351_v53  ;;  %2478 = vmatmul.mubr.msk.bf16.vlgmr.msra.gmra.mxu1 %vm247_vm3, %v2351_v53  ;;  %v2964_v61 = vsel %vm251_vm2, %v678_v56, 0 }
  0xb1   : > { %725 = vmatprep.mubr.bf16.mxu0 %v2731_v1  ;;  %2483 = vmatprep.mubr.msk.bf16.mxu1 %vm2732_vm0, %v2730_v0 }
  0xb2   : > { %v676_v57 = vpop.permute.xlu1 %675  ;;  %v674_v58 = vpop.permute.xlu0 %673 }
  0xb3   : > { %v2961_v59 = vsel %vm677_vm7, %v672_v54, %v674_v58  ;;  %v680_v60 = vsel %vm677_vm7, %v674_v58, %v676_v57 }
  0xb4   : > { %v2967_v62 = vsel %vm251_vm2, %v680_v60, 0  ;;  %2356 = vmatprep.subr.msk.bf16.mxu0 %vm251_vm2, %v2961_v59 }
  0xb5   : > { %708 = vmatpush1.bf16.msra.mxu0 %v2964_v61  ;;  %2482 = vmatpush3.bf16.msra.mxu1 %v2967_v62 }
  0xb6   : > { %v782_v2 = vpop.permute.xlu1 %781  ;;  %v780_v3 = vpop.permute.xlu0 %779  ;;  %2487 = vmatprep.subr.bf16.mxu1 %v2730_v0 }
  0xb7   : > { %v788_v4 = vsel %vm787_vm8, %v780_v3, %v782_v2  ;;  %v2386_v3 = vld [vmem:[%s3209_s1 + $0x28] sm:$0xf] }
  0xb8   : > { %2357 = vmatmul.mubr.msk.bf16.vlgmr.msra.gmra.mxu0 %vm247_vm3, %v2355_v63  ;;  %2484 = vmatmul.mubr.msk.bf16.vlgmr.msra.gmra.mxu1 %vm247_vm3, %v2355_v63  ;;  %v795_v11 = vsel %vm251_vm2, %v788_v4, 0 }
  0xb9   : > { %835 = vmatprep.mubr.bf16.mxu0 %v2731_v1  ;;  %2489 = vmatprep.mubr.msk.bf16.mxu1 %vm2732_vm0, %v2730_v0 }
  0xba   : > { %v786_v6 = vpop.permute.xlu1 %785  ;;  %v784_v8 = vpop.permute.xlu0 %783 }
  0xbb   : > { %v789_v9 = vsel %vm787_vm8, %v782_v2, %v784_v8  ;;  %v790_v10 = vsel %vm787_vm8, %v784_v8, %v786_v6 }
  0xbc   : > { %v801_v12 = vsel %vm251_vm2, %v790_v10, 0  ;;  %2360 = vmatprep.subr.msk.bf16.mxu0 %vm251_vm2, %v789_v9  ;;  %v2211_v10 = vld [vmem:[%s3210_s2] sm:$0xff] }
  0xbd   : > { %818 = vmatpush1.bf16.msra.mxu0 %v795_v11  ;;  %2488 = vmatpush3.bf16.msra.mxu1 %v801_v12 }
  0xbe   : > { %v904_v14 = vpop.permute.xlu1 %903  ;;  %v902_v15 = vpop.permute.xlu0 %901  ;;  %2493 = vmatprep.subr.bf16.mxu1 %v2730_v0  ;;  %2214 = vperm.xlu0 %2642, %v2211_v10  }
  0xbf   : > { %v910_v16 = vsel %vm909_vm9, %v902_v15, %v904_v14 }
  0xc0   : > { %2361 = vmatmul.mubr.msk.bf16.vlgmr.msra.gmra.mxu0 %vm247_vm3, %v2359_v13  ;;  %2490 = vmatmul.mubr.msk.bf16.vlgmr.msra.gmra.mxu1 %vm247_vm3, %v2359_v13  ;;  %v917_v21 = vsel %vm251_vm2, %v910_v16, 0  ;;  %v2390_v16 = vld [vmem:[%s3209_s1 + $0x2c] sm:$0xf] }
  0xc1   : > { %957 = vmatprep.mubr.bf16.mxu0 %v2731_v1  ;;  %2495 = vmatprep.mubr.msk.bf16.mxu1 %vm2732_vm0, %v2730_v0 }
  0xc2   : > { %v908_v17 = vpop.permute.xlu1 %907  ;;  %v906_v18 = vpop.permute.xlu0 %905 }
  0xc3   : > { %v911_v19 = vsel %vm909_vm9, %v904_v14, %v906_v18  ;;  %v912_v20 = vsel %vm909_vm9, %v906_v18, %v908_v17 }
  0xc4   : > { %v923_v22 = vsel %vm251_vm2, %v912_v20, 0  ;;  %2368 = vmatprep.subr.msk.bf16.mxu0 %vm251_vm2, %v911_v19 }
  0xc5   : > { %940 = vmatpush1.bf16.msra.mxu0 %v917_v21  ;;  %2494 = vmatpush3.bf16.msra.mxu1 %v923_v22 }
  0xc6   : > { %v1014_v24 = vpop.permute.xlu1 %1013  ;;  %v1012_v25 = vpop.permute.xlu0 %1011  ;;  %2499 = vmatprep.subr.bf16.mxu1 %v2730_v0 }
  0xc7   : > { %v1020_v26 = vsel %vm1019_vm10, %v1012_v25, %v1014_v24 }
  0xc8   : > { %2369 = vmatmul.mubr.msk.bf16.vlgmr.msra.gmra.mxu0 %vm247_vm3, %v2363_v23  ;;  %2496 = vmatmul.mubr.msk.bf16.vlgmr.msra.gmra.mxu1 %vm247_vm3, %v2363_v23  ;;  %v1027_v31 = vsel %vm251_vm2, %v1020_v26, 0  ;;  %v2394_v23 = vld [vmem:[%s3209_s1 + $0x30] sm:$0xf] }
  0xc9   : > { %1067 = vmatprep.mubr.bf16.mxu0 %v2731_v1  ;;  %2501 = vmatprep.mubr.msk.bf16.mxu1 %vm2732_vm0, %v2730_v0 }
  0xca   : > { %v1018_v27 = vpop.permute.xlu1 %1017  ;;  %v1016_v28 = vpop.permute.xlu0 %1015 }
  0xcb   : > { %v1021_v29 = vsel %vm1019_vm10, %v1014_v24, %v1016_v28  ;;  %v1022_v30 = vsel %vm1019_vm10, %v1016_v28, %v1018_v27 }
  0xcc   : > { %v1033_v32 = vsel %vm251_vm2, %v1022_v30, 0  ;;  %2372 = vmatprep.subr.msk.bf16.mxu0 %vm251_vm2, %v1021_v29  ;;  %v2398_v30 = vld [vmem:[%s3209_s1 + $0x34] sm:$0xf] }
  0xcd   : > { %1050 = vmatpush1.bf16.msra.mxu0 %v1027_v31  ;;  %2500 = vmatpush3.bf16.msra.mxu1 %v1033_v32 }
  0xce   : > { %v1124_v34 = vpop.permute.xlu1 %1123  ;;  %v1122_v35 = vpop.permute.xlu0 %1121  ;;  %2505 = vmatprep.subr.bf16.mxu1 %v2730_v0 }
  0xcf   : > { %v1130_v36 = vsel %vm1129_vm11, %v1122_v35, %v1124_v34 }
  0xd0   : > { %2373 = vmatmul.mubr.msk.bf16.vlgmr.msra.gmra.mxu0 %vm247_vm3, %v2371_v33  ;;  %2502 = vmatmul.mubr.msk.bf16.vlgmr.msra.gmra.mxu1 %vm247_vm3, %v2371_v33  ;;  %v1137_v42 = vsel %vm251_vm2, %v1130_v36, 0 }
  0xd1   : > { %1177 = vmatprep.mubr.bf16.mxu0 %v2731_v1  ;;  %2507 = vmatprep.mubr.msk.bf16.mxu1 %vm2732_vm0, %v2730_v0 }
  0xd2   : > { %v1128_v37 = vpop.permute.xlu1 %1127  ;;  %v1126_v38 = vpop.permute.xlu0 %1125 }
  0xd3   : > { %v1131_v40 = vsel %vm1129_vm11, %v1124_v34, %v1126_v38  ;;  %v1132_v41 = vsel %vm1129_vm11, %v1126_v38, %v1128_v37  ;;  %v2402_v38 = vld [vmem:[%s3209_s1 + $0x38] sm:$0xf] }
  0xd4   : > { %v1143_v43 = vsel %vm251_vm2, %v1132_v41, 0  ;;  %2376 = vmatprep.subr.msk.bf16.mxu0 %vm251_vm2, %v1131_v40 }
  0xd5   : > { %1160 = vmatpush1.bf16.msra.mxu0 %v1137_v42  ;;  %2506 = vmatpush3.bf16.msra.mxu1 %v1143_v43 }
  0xd6   : > { %v1340_v45 = vpop.permute.xlu0 %1339  ;;  %2383 = vmatprep.subr.msk.bf16.mxu0 %vm251_vm2, %v2847_v7  ;;  %2511 = vmatprep.subr.bf16.mxu1 %v2730_v0  ;;  %v1342_v46 = vpop.permute.xlu1 %1341 }
  0xd7   : > { %v1348_v50 = vsel %vm1347_vm12, %v1340_v45, %v1342_v46 }
  0xd8   : > { %2377 = vmatmul.mubr.msk.bf16.vlgmr.msra.gmra.mxu0 %vm247_vm3, %v2375_v44  ;;  %2508 = vmatmul.mubr.msk.bf16.vlgmr.msra.gmra.mxu1 %vm247_vm3, %v2375_v44  ;;  %v1355_v53 = vsel %vm251_vm2, %v1348_v50, 0 }
  0xd9   : > { %1268 = vmatpush1.bf16.msra.mxu0 %v1245_v47  ;;  %2512 = vmatpush3.bf16.msra.mxu1 %v1251_v48 }
  0xda   : > { %v1344_v49 = vpop.permute.xlu0 %1343  ;;  %1285 = vmatprep.mubr.bf16.mxu0 %v2731_v1  ;;  %2513 = vmatprep.mubr.msk.bf16.mxu1 %vm2732_vm0, %v2730_v0  ;;  %v1346_v7 = vpop.permute.xlu1 %1345 }
  0xdb   : > { %v1349_v51 = vsel %vm1347_vm12, %v1342_v46, %v1344_v49  ;;  %v1350_v52 = vsel %vm1347_vm12, %v1344_v49, %v1346_v7  ;;  %2517 = vmatprep.subr.bf16.mxu1 %v2730_v0  ;;  %v2406_v46 = vld [vmem:[%s3209_s1 + $0x3c] sm:$0xf] }
  0xdc   : > { %2387 = vmatprep.subr.msk.bf16.mxu0 %vm251_vm2, %v1349_v51  ;;  %v1361_v54 = vsel %vm251_vm2, %v1350_v52, 0 }
  0xde   : > { %v1450_v55 = vpop.permute.xlu0 %1449  ;;  %v1452_v56 = vpop.permute.xlu1 %1451 }
  0xdf   : > { %v1458_v60 = vsel %vm1457_vm13, %v1450_v55, %v1452_v56  ;;  %v2414_v55 = vld [vmem:[%s3209_s1 + $0x44] sm:$0xf] }
  0xe0   : > { %2384 = vmatmul.mubr.msk.bf16.vlgmr.msra.gmra.mxu0 %vm247_vm3, %v2379_v5  ;;  %2514 = vmatmul.mubr.msk.bf16.vlgmr.msra.gmra.mxu1 %vm247_vm3, %v2379_v5  ;;  %v1465_v4 = vsel %vm251_vm2, %v1458_v60, 0  ;;  %v2410_v5 = vld [vmem:[%s3209_s1 + $0x40] sm:$0xf] }
  0xe1   : > { %1378 = vmatpush1.bf16.msra.mxu0 %v1355_v53  ;;  %2518 = vmatpush3.bf16.msra.mxu1 %v1361_v54 }
  0xe2   : > { %v1454_v57 = vpop.permute.xlu0 %1453  ;;  %1395 = vmatprep.mubr.bf16.mxu0 %v2731_v1  ;;  %2519 = vmatprep.mubr.msk.bf16.mxu1 %vm2732_vm0, %v2730_v0  ;;  %v1456_v58 = vpop.permute.xlu1 %1455 }
  0xe3   : > { %v1459_v63 = vsel %vm1457_vm13, %v1452_v56, %v1454_v57  ;;  %v1460_v2 = vsel %vm1457_vm13, %v1454_v57, %v1456_v58  ;;  %2523 = vmatprep.subr.bf16.mxu1 %v2730_v0 }
  0xe4   : > { %2391 = vmatprep.subr.msk.bf16.mxu0 %vm251_vm2, %v1459_v63  ;;  %v1471_v6 = vsel %vm251_vm2, %v1460_v2, 0 }
  0xe6   : > { %v1560_v8 = vpop.permute.xlu0 %1559  ;;  %v1562_v9 = vpop.permute.xlu1 %1561 }
  0xe7   : > { %v1568_v13 = vsel %vm1567_vm14, %v1560_v8, %v1562_v9 }
  0xe8   : > { %2388 = vmatmul.mubr.msk.bf16.vlgmr.msra.gmra.mxu0 %vm247_vm3, %v2386_v3  ;;  %2520 = vmatmul.mubr.msk.bf16.vlgmr.msra.gmra.mxu1 %vm247_vm3, %v2386_v3  ;;  %v1575_v17 = vsel %vm251_vm2, %v1568_v13, 0 }
  0xe9   : > { %1488 = vmatpush1.bf16.msra.mxu0 %v1465_v4  ;;  %2524 = vmatpush3.bf16.msra.mxu1 %v1471_v6 }
  0xea   : > { %v1564_v11 = vpop.permute.xlu0 %1563  ;;  %1505 = vmatprep.mubr.bf16.mxu0 %v2731_v1  ;;  %2525 = vmatprep.mubr.msk.bf16.mxu1 %vm2732_vm0, %v2730_v0  ;;  %v1566_v12 = vpop.permute.xlu1 %1565 }
  0xeb   : > { %v1569_v14 = vsel %vm1567_vm14, %v1562_v9, %v1564_v11  ;;  %v1570_v15 = vsel %vm1567_vm14, %v1564_v11, %v1566_v12  ;;  %2529 = vmatprep.subr.bf16.mxu1 %v2730_v0 }
  0xec   : > { %2395 = vmatprep.subr.msk.bf16.mxu0 %vm251_vm2, %v1569_v14  ;;  %v1581_v18 = vsel %vm251_vm2, %v1570_v15, 0 }
  0xee   : > { %v1759_v19 = vpop.permute.xlu0 %1758  ;;  %v1761_v20 = vpop.permute.xlu1 %1760 }
  0xef   : > { %v1767_v28 = vsel %vm1766_vm15, %v1759_v19, %v1761_v20 }
  0xf0   : > { %2392 = vmatmul.mubr.msk.bf16.vlgmr.msra.gmra.mxu0 %vm247_vm3, %v2390_v16  ;;  %2526 = vmatmul.mubr.msk.bf16.vlgmr.msra.gmra.mxu1 %vm247_vm3, %v2390_v16 }
  0xf1   : > { %1598 = vmatpush1.bf16.msra.mxu0 %v1575_v17  ;;  %2530 = vmatpush3.bf16.msra.mxu1 %v1581_v18 }
  0xf2   : > { %2399 = vmatprep.subr.msk.bf16.mxu0 %vm251_vm2, %v2961_v59  ;;  %1615 = vmatprep.mubr.bf16.mxu0 %v2731_v1  ;;  %v1763_v21 = vpop.permute.xlu0 %1762  ;;  %v1765_v22 = vpop.permute.xlu1 %1764 }
  0xf3   : > { %2531 = vmatprep.mubr.msk.bf16.mxu1 %vm2732_vm0, %v2730_v0  ;;  %2535 = vmatprep.subr.bf16.mxu1 %v2730_v0  ;;  %v1768_v59 = vsel %vm1766_vm15, %v1761_v20, %v1763_v21  ;;  %v1769_v29 = vsel %vm1766_vm15, %v1763_v21, %v1765_v22 }
  0xf6   : > { %v1869_v24 = vpop.permute.xlu0 %1868  ;;  %v1871_v25 = vpop.permute.xlu1 %1870 }
  0xf7   : > { %v1877_v35 = vsel %vm1876_vm1, %v1869_v24, %v1871_v25 }
  0xf8   : > { %2396 = vmatmul.mubr.msk.bf16.vlgmr.msra.gmra.mxu0 %vm247_vm3, %v2394_v23  ;;  %2532 = vmatmul.mubr.msk.bf16.vlgmr.msra.gmra.mxu1 %vm247_vm3, %v2394_v23  ;;  %v1884_v39 = vsel %vm251_vm2, %v1877_v35, 0 }
  0xf9   : > { %1687 = vmatpush1.bf16.msra.mxu0 %v2964_v61  ;;  %2536 = vmatpush3.bf16.msra.mxu1 %v2967_v62  ;;  %v1774_v61 = vsel %vm251_vm2, %v1767_v28, 0  ;;  %v1780_v62 = vsel %vm251_vm2, %v1769_v29, 0 }
  0xfa   : > { %1704 = vmatprep.mubr.bf16.mxu0 %v2731_v1  ;;  %2537 = vmatprep.mubr.msk.bf16.mxu1 %vm2732_vm0, %v2730_v0  ;;  %v1873_v26 = vpop.permute.xlu0 %1872  ;;  %v1875_v27 = vpop.permute.xlu1 %1874 }
  0xfb   : > { %2403 = vmatprep.subr.msk.bf16.mxu0 %vm251_vm2, %v1768_v59  ;;  %2541 = vmatprep.subr.bf16.mxu1 %v2730_v0  ;;  %v1878_v33 = vsel %vm1876_vm1, %v1871_v25, %v1873_v26  ;;  %v1879_v36 = vsel %vm1876_vm1, %v1873_v26, %v1875_v27 }
  0xfc   : > { %v1890_v40 = vsel %vm251_vm2, %v1879_v36, 0 }
  0xfe   : > { %v1979_v31 = vpop.permute.xlu0 %1978  ;;  %v1981_v32 = vpop.permute.xlu1 %1980 }
  0xff   : > { %v1987_v44 = vsel %vm1986_vm4, %v1979_v31, %v1981_v32 }
 0x100   : > { %2400 = vmatmul.mubr.msk.bf16.vlgmr.msra.gmra.mxu0 %vm247_vm3, %v2398_v30  ;;  %2538 = vmatmul.mubr.msk.bf16.vlgmr.msra.gmra.mxu1 %vm247_vm3, %v2398_v30  ;;  %v1994_v48 = vsel %vm251_vm2, %v1987_v44, 0 }
 0x101   : > { %1797 = vmatpush1.bf16.msra.mxu0 %v1774_v61  ;;  %2542 = vmatpush3.bf16.msra.mxu1 %v1780_v62 }
 0x102   : > { %1814 = vmatprep.mubr.bf16.mxu0 %v2731_v1  ;;  %2543 = vmatprep.mubr.msk.bf16.mxu1 %vm2732_vm0, %v2730_v0  ;;  %v1983_v34 = vpop.permute.xlu0 %1982  ;;  %v1985_v37 = vpop.permute.xlu1 %1984 }
 0x103   : > { %2407 = vmatprep.subr.msk.bf16.mxu0 %vm251_vm2, %v1878_v33  ;;  %2547 = vmatprep.subr.bf16.mxu1 %v2730_v0  ;;  %v1988_v42 = vsel %vm1986_vm4, %v1981_v32, %v1983_v34  ;;  %v1989_v45 = vsel %vm1986_vm4, %v1983_v34, %v1985_v37 }
 0x104   : > { %v2000_v49 = vsel %vm251_vm2, %v1989_v45, 0 }
 0x106   : > { %v2089_v41 = vpop.permute.xlu0 %2088 }
 0x108   : > { %2404 = vmatmul.mubr.msk.bf16.vlgmr.msra.gmra.mxu0 %vm247_vm3, %v2402_v38  ;;  %2544 = vmatmul.mubr.msk.bf16.vlgmr.msra.gmra.mxu1 %vm247_vm3, %v2402_v38  ;;  %v2091_v43 = vpop.permute.xlu1 %2090 }
 0x109   : > { %1907 = vmatpush1.bf16.msra.mxu0 %v1884_v39  ;;  %2548 = vmatpush3.bf16.msra.mxu1 %v1890_v40  ;;  %v2097_v51 = vsel %vm2096_vm5, %v2089_v41, %v2091_v43 }
 0x10a   : > { %1924 = vmatprep.mubr.bf16.mxu0 %v2731_v1  ;;  %2549 = vmatprep.mubr.msk.bf16.mxu1 %vm2732_vm0, %v2730_v0  ;;  %v2104_v53 = vsel %vm251_vm2, %v2097_v51, 0 }
 0x10b   : > { %2411 = vmatprep.subr.msk.bf16.mxu0 %vm251_vm2, %v1988_v42  ;;  %2553 = vmatprep.subr.bf16.mxu1 %v2730_v0 }
 0x10c   : > { %v2093_v47 = vpop.permute.xlu0 %2092  ;;  %v2095_v50 = vpop.permute.xlu1 %2094 }
 0x10d   : > { %v2098_v7 = vsel %vm2096_vm5, %v2091_v43, %v2093_v47  ;;  %v2099_v52 = vsel %vm2096_vm5, %v2093_v47, %v2095_v50 }
 0x10e   : > { %v2110_v54 = vsel %vm251_vm2, %v2099_v52, 0 }
 0x110   : > { %2408 = vmatmul.mubr.msk.bf16.vlgmr.msra.gmra.mxu0 %vm247_vm3, %v2406_v46  ;;  %2550 = vmatmul.mubr.msk.bf16.vlgmr.msra.gmra.mxu1 %vm247_vm3, %v2406_v46 }
 0x111   : > { %2017 = vmatpush1.bf16.msra.mxu0 %v1994_v48  ;;  %2554 = vmatpush3.bf16.msra.mxu1 %v2000_v49 }
 0x112   : > { %2034 = vmatprep.mubr.bf16.mxu0 %v2731_v1  ;;  %2555 = vmatprep.mubr.msk.bf16.mxu1 %vm2732_vm0, %v2730_v0 }
 0x113   : > { %2415 = vmatprep.subr.msk.bf16.mxu0 %vm251_vm2, %v2098_v7  ;;  %2559 = vmatprep.subr.bf16.mxu1 %v2730_v0 }
 0x118   : > { %2412 = vmatmul.mubr.msk.bf16.vlgmr.msra.gmra.mxu0 %vm247_vm3, %v2410_v5  ;;  %2556 = vmatmul.mubr.msk.bf16.vlgmr.msra.gmra.mxu1 %vm247_vm3, %v2410_v5 }
 0x119   : > { %2127 = vmatpush1.bf16.msra.mxu0 %v2104_v53  ;;  %2560 = vmatpush3.bf16.msra.mxu1 %v2110_v54 }
 0x11a   : > { %2144 = vmatprep.mubr.bf16.mxu0 %v2731_v1  ;;  %2561 = vmatprep.mubr.msk.bf16.mxu1 %vm2732_vm0, %v2730_v0 }
 0x120   : > { %2416 = vmatmul.mubr.msk.bf16.vlgmr.msra.gmra.mxu0 %vm247_vm3, %v2414_v55  ;;  %2562 = vmatmul.mubr.msk.bf16.vlgmr.msra.gmra.mxu1 %vm247_vm3, %v2414_v55 }
 0x158   : > { %v295_v56 = vpop.f32.mrf.mxu0  ;;  %v336_v57 = vpop.f32.mrf.mxu1 }
 0x15a   : > { %v297_v58 = vpop.f32.mrf.mxu0  ;;  %v2461_v60 = vpop.f32.mrf.mxu1 }
 0x15c   : > { %v299_v63 = vpop.f32.mrf.mxu0  ;;  %v339_v2 = vpop.f32.mrf.mxu1 }
 0x15e   : > { %v300_v3 = vpop.f32.mrf.mxu0  ;;  %v2462_v4 = vpop.f32.mrf.mxu1 }
 0x160   : > { %v400_v1 = vpop.f32.mrf.mxu0  ;;  %v441_v6 = vpop.f32.mrf.mxu1 }
 0x161   : > { %v401_v8 = vadd.f32 %v400_v1, %v295_v56  ;;  %v442_v0 = vadd.f32 %v441_v6, %v336_v57 }
 0x162   : > { %v402_v9 = vpop.f32.mrf.mxu0  ;;  %v2467_v10 = vpop.f32.mrf.mxu1 }
 0x163   : > { %v403_v11 = vadd.f32 %v402_v9, %v297_v58 }
 0x164   : > { %v404_v12 = vpop.f32.mrf.mxu0  ;;  %v444_v13 = vpop.f32.mrf.mxu1 }
 0x166   : > { %v405_v14 = vpop.f32.mrf.mxu0  ;;  %v2468_v15 = vpop.f32.mrf.mxu1 }
 0x168   : > { %v507_v16 = vpop.f32.mrf.mxu0  ;;  %v548_v17 = vpop.f32.mrf.mxu1 }
 0x169   : > { %v554_v18 = vadd.f32 %v507_v16, %v401_v8  ;;  %v556_v19 = vadd.f32 %v548_v17, %v442_v0 }
 0x16a   : > { %v509_v20 = vpop.f32.mrf.mxu0  ;;  %v2473_v21 = vpop.f32.mrf.mxu1 }
 0x16b   : > { %v555_v22 = vadd.f32 %v509_v20, %v403_v11 }
 0x16c   : > { %v511_v23 = vpop.f32.mrf.mxu0  ;;  %v551_v24 = vpop.f32.mrf.mxu1 }
 0x16e   : > { %v512_v25 = vpop.f32.mrf.mxu0  ;;  %v2474_v59 = vpop.f32.mrf.mxu1 }
 0x170   : > { %v617_v26 = vpop.f32.mrf.mxu0  ;;  %v658_v27 = vpop.f32.mrf.mxu1 }
 0x171   : > { %v664_v28 = vadd.f32 %v617_v26, %v554_v18  ;;  %v666_v29 = vadd.f32 %v658_v27, %v556_v19 }
 0x172   : > { %v619_v30 = vpop.f32.mrf.mxu0  ;;  %v2479_v61 = vpop.f32.mrf.mxu1 }
 0x173   : > { %v665_v62 = vadd.f32 %v619_v30, %v555_v22 }
 0x174   : > { %v621_v31 = vpop.f32.mrf.mxu0  ;;  %v661_v32 = vpop.f32.mrf.mxu1 }
 0x176   : > { %v622_v33 = vpop.f32.mrf.mxu0  ;;  %v2480_v34 = vpop.f32.mrf.mxu1 }
 0x178   : > { %v727_v35 = vpop.f32.mrf.mxu0  ;;  %v768_v36 = vpop.f32.mrf.mxu1 }
 0x179   : > { %v774_v37 = vadd.f32 %v727_v35, %v664_v28  ;;  %v776_v38 = vadd.f32 %v768_v36, %v666_v29 }
 0x17a   : > { %v729_v39 = vpop.f32.mrf.mxu0  ;;  %v2485_v40 = vpop.f32.mrf.mxu1 }
 0x17b   : > { %v775_v41 = vadd.f32 %v729_v39, %v665_v62 }
 0x17c   : > { %v731_v42 = vpop.f32.mrf.mxu0  ;;  %v771_v43 = vpop.f32.mrf.mxu1 }
 0x17e   : > { %v732_v44 = vpop.f32.mrf.mxu0  ;;  %v2486_v45 = vpop.f32.mrf.mxu1 }
 0x180   : > { %v837_v46 = vpop.f32.mrf.mxu0  ;;  %v878_v47 = vpop.f32.mrf.mxu1 }
 0x181   : > { %v884_v48 = vadd.f32 %v837_v46, %v774_v37  ;;  %v886_v49 = vadd.f32 %v878_v47, %v776_v38 }
 0x182   : > { %v839_v7 = vpop.f32.mrf.mxu0  ;;  %v2491_v50 = vpop.f32.mrf.mxu1 }
 0x183   : > { %v885_v51 = vadd.f32 %v839_v7, %v775_v41 }
 0x184   : > { %v841_v52 = vpop.f32.mrf.mxu0  ;;  %v881_v5 = vpop.f32.mrf.mxu1 }
 0x186   : > { %v842_v53 = vpop.f32.mrf.mxu0  ;;  %v2492_v54 = vpop.f32.mrf.mxu1 }
 0x188   : > { %v959_v55 = vpop.f32.mrf.mxu0  ;;  %v1000_v56 = vpop.f32.mrf.mxu1 }
 0x189   : > { %v3141_v57 = vadd.f32 %v959_v55, %v884_v48  ;;  %v3143_v58 = vadd.f32 %v1000_v56, %v886_v49 }
 0x18a   : > { %v961_v60 = vpop.f32.mrf.mxu0  ;;  %v2497_v63 = vpop.f32.mrf.mxu1 }
 0x18b   : > { %v3145_v2 = vadd.f32 %v961_v60, %v885_v51 }
 0x18c   : > { %v963_v3 = vpop.f32.mrf.mxu0  ;;  %v1003_v4 = vpop.f32.mrf.mxu1 }
 0x18e   : > { %v964_v1 = vpop.f32.mrf.mxu0  ;;  %v2498_v6 = vpop.f32.mrf.mxu1 }
 0x190   : > { %v1069_v8 = vpop.f32.mrf.mxu0  ;;  %v1110_v0 = vpop.f32.mrf.mxu1 }
 0x192   : > { %v3147_v9 = vpop.f32.mrf.mxu0  ;;  %v2503_v10 = vpop.f32.mrf.mxu1 }
 0x194   : > { %v1073_v11 = vpop.f32.mrf.mxu0  ;;  %v1113_v12 = vpop.f32.mrf.mxu1 }
 0x195   : > { %v1116_v11 = vadd.f32 %v1069_v8, %v3141_v57  ;;  %v1118_v12 = vadd.f32 %v1110_v0, %v3143_v58 }
 0x196   : > { %v1074_v13 = vpop.f32.mrf.mxu0  ;;  %v2504_v14 = vpop.f32.mrf.mxu1 }
 0x198   : > { %v1179_v15 = vpop.f32.mrf.mxu0  ;;  %v1220_v16 = vpop.f32.mrf.mxu1 }
 0x19a   : > { %v1181_v17 = vpop.f32.mrf.mxu0  ;;  %v2509_v18 = vpop.f32.mrf.mxu1 }
 0x19b   : > { %v1117_v18 = vadd.f32 %v3147_v9, %v3145_v2 }
 0x19c   : > { %v1183_v19 = vpop.f32.mrf.mxu0  ;;  %v1223_v20 = vpop.f32.mrf.mxu1 }
 0x19d   : > { %v1226_v19 = vadd.f32 %v1179_v15, %v1116_v11  ;;  %v1228_v20 = vadd.f32 %v1220_v16, %v1118_v12 }
 0x19e   : > { %v1184_v21 = vpop.f32.mrf.mxu0  ;;  %v2510_v22 = vpop.f32.mrf.mxu1 }
 0x1a0   : > { %v1287_v23 = vpop.f32.mrf.mxu0  ;;  %v1328_v24 = vpop.f32.mrf.mxu1 }
 0x1a2   : > { %v1289_v25 = vpop.f32.mrf.mxu0  ;;  %v2515_v59 = vpop.f32.mrf.mxu1 }
 0x1a3   : > { %v1227_v59 = vadd.f32 %v1181_v17, %v1117_v18 }
 0x1a4   : > { %v1291_v26 = vpop.f32.mrf.mxu0  ;;  %v1331_v27 = vpop.f32.mrf.mxu1 }
 0x1a5   : > { %v1334_v26 = vadd.f32 %v1287_v23, %v1226_v19  ;;  %v1336_v27 = vadd.f32 %v1328_v24, %v1228_v20 }
 0x1a6   : > { %v1292_v28 = vpop.f32.mrf.mxu0  ;;  %v2516_v29 = vpop.f32.mrf.mxu1 }
 0x1a8   : > { %v1397_v30 = vpop.f32.mrf.mxu0  ;;  %v1438_v61 = vpop.f32.mrf.mxu1 }
 0x1a9   : > { %v1446_v57 = vadd.f32 %v1438_v61, %v1336_v27 }
 0x1aa   : > { %v1399_v62 = vpop.f32.mrf.mxu0  ;;  %v2521_v31 = vpop.f32.mrf.mxu1 }
 0x1ab   : > { %v1335_v31 = vadd.f32 %v1289_v25, %v1227_v59 }
 0x1ac   : > { %v1401_v32 = vpop.f32.mrf.mxu0  ;;  %v1441_v33 = vpop.f32.mrf.mxu1 }
 0x1ad   : > { %v1444_v32 = vadd.f32 %v1397_v30, %v1334_v26  ;;  %v1445_v0 = vadd.f32 %v1399_v62, %v1335_v31 }
 0x1ae   : > { %v1402_v34 = vpop.f32.mrf.mxu0  ;;  %v2522_v35 = vpop.f32.mrf.mxu1 }
 0x1b0   : > { %v1507_v36 = vpop.f32.mrf.mxu0  ;;  %v1548_v37 = vpop.f32.mrf.mxu1 }
 0x1b1   : > { %v1554_v33 = vadd.f32 %v1507_v36, %v1444_v32  ;;  %v1556_v34 = vadd.f32 %v1548_v37, %v1446_v57 }
 0x1b2   : > { %v1509_v38 = vpop.f32.mrf.mxu0  ;;  %v2527_v39 = vpop.f32.mrf.mxu1 }
 0x1b3   : > { %v1555_v9 = vadd.f32 %v1509_v38, %v1445_v0 }
 0x1b4   : > { %v1511_v40 = vpop.f32.mrf.mxu0  ;;  %v1551_v41 = vpop.f32.mrf.mxu1 }
 0x1b6   : > { %v1512_v42 = vpop.f32.mrf.mxu0  ;;  %v2528_v43 = vpop.f32.mrf.mxu1 }
 0x1b8   : > { %v1617_v44 = vpop.f32.mrf.mxu0  ;;  %v1658_v45 = vpop.f32.mrf.mxu1 }
 0x1b9   : > { %v1664_v15 = vadd.f32 %v1617_v44, %v1554_v33  ;;  %v1666_v16 = vadd.f32 %v1658_v45, %v1556_v34 }
 0x1ba   : > { %v1619_v46 = vpop.f32.mrf.mxu0  ;;  %v2533_v47 = vpop.f32.mrf.mxu1 }
 0x1bb   : > { %v1665_v24 = vadd.f32 %v1619_v46, %v1555_v9 }
 0x1bc   : > { %v1621_v48 = vpop.f32.mrf.mxu0  ;;  %v1661_v49 = vpop.f32.mrf.mxu1 }
 0x1bd   : > { %v2215_v49 = vpop.permute.xlu0 %2214 }
 0x1be   : > { %v1622_v7 = vpop.f32.mrf.mxu0  ;;  %v2534_v50 = vpop.f32.mrf.mxu1 }
 0x1c0   : > { %v1706_v51 = vpop.f32.mrf.mxu0  ;;  %v1747_v52 = vpop.f32.mrf.mxu1 }
 0x1c1   : > { %v1753_v39 = vadd.f32 %v1706_v51, %v1664_v15  ;;  %v1755_v40 = vadd.f32 %v1747_v52, %v1666_v16 }
 0x1c2   : > { %v1708_v5 = vpop.f32.mrf.mxu0  ;;  %v2539_v53 = vpop.f32.mrf.mxu1 }
 0x1c3   : > { %v1754_v61 = vadd.f32 %v1708_v5, %v1665_v24 }
 0x1c4   : > { %v1710_v54 = vpop.f32.mrf.mxu0  ;;  %v1750_v55 = vpop.f32.mrf.mxu1 }
 0x1c6   : > { %v1711_v56 = vpop.f32.mrf.mxu0  ;;  %v2540_v60 = vpop.f32.mrf.mxu1 }
 0x1c8   : > { %v1816_v63 = vpop.f32.mrf.mxu0  ;;  %v1857_v3 = vpop.f32.mrf.mxu1 }
 0x1c9   : > { %v1863_v41 = vadd.f32 %v1816_v63, %v1753_v39  ;;  %v1865_v42 = vadd.f32 %v1857_v3, %v1755_v40 }
 0x1ca   : > { %v1818_v4 = vpop.f32.mrf.mxu0  ;;  %v2545_v1 = vpop.f32.mrf.mxu1 }
 0x1cb   : > { %v1864_v37 = vadd.f32 %v1818_v4, %v1754_v61 }
 0x1cc   : > { %v1820_v6 = vpop.f32.mrf.mxu0  ;;  %v1860_v10 = vpop.f32.mrf.mxu1 }
 0x1ce   : > { %v1821_v13 = vpop.f32.mrf.mxu0  ;;  %v2546_v14 = vpop.f32.mrf.mxu1 }
 0x1d0   : > { %v1926_v21 = vpop.f32.mrf.mxu0  ;;  %v1967_v22 = vpop.f32.mrf.mxu1 }
 0x1d1   : > { %v1973_v38 = vadd.f32 %v1926_v21, %v1863_v41  ;;  %v1975_v43 = vadd.f32 %v1967_v22, %v1865_v42 }
 0x1d2   : > { %v1928_v28 = vpop.f32.mrf.mxu0  ;;  %v2551_v29 = vpop.f32.mrf.mxu1 }
 0x1d3   : > { %v1974_v47 = vadd.f32 %v1928_v28, %v1864_v37 }
 0x1d4   : > { %v1930_v8 = vpop.f32.mrf.mxu0  ;;  %v1970_v58 = vpop.f32.mrf.mxu1 }
 0x1d6   : > { %v1931_v35 = vpop.f32.mrf.mxu0  ;;  %v2552_v2 = vpop.f32.mrf.mxu1 }
 0x1d8   : > { %v2036_v17 = vpop.f32.mrf.mxu0  ;;  %v2077_v23 = vpop.f32.mrf.mxu1 }
 0x1d9   : > { %v2083_v48 = vadd.f32 %v2036_v17, %v1973_v38  ;;  %v2085_v46 = vadd.f32 %v2077_v23, %v1975_v43 }
 0x1da   : > { %v2038_v25 = vpop.f32.mrf.mxu0  ;;  %v2557_v30 = vpop.f32.mrf.mxu1 }
 0x1db   : > { %v2084_v51 = vadd.f32 %v2038_v25, %v1974_v47 }
 0x1dc   : > { %v2040_v62 = vpop.f32.mrf.mxu0  ;;  %v2080_v36 = vpop.f32.mrf.mxu1 }
 0x1de   : > { %v2041_v44 = vpop.f32.mrf.mxu0  ;;  %v2558_v45 = vpop.f32.mrf.mxu1 }
 0x1e0   : > { %v2146_v7 = vpop.f32.mrf.mxu0  ;;  %v2187_v50 = vpop.f32.mrf.mxu1 }
 0x1e1   : > { %v2193_v52 = vadd.f32 %v2146_v7, %v2083_v48  ;;  %v2195_v5 = vadd.f32 %v2187_v50, %v2085_v46 }
 0x1e2   : > { %v2148_v53 = vpop.f32.mrf.mxu0  ;;  %v2563_v54 = vpop.f32.mrf.mxu1 }
 0x1e3   : > { %v2194_v55 = vadd.f32 %v2148_v53, %v2084_v51  ;;  %v2217_v56 = vadd.f32 %v2215_v49, %v2193_v52  ;;  %v2219_v60 = vadd.f32 %v2215_v49, %v2195_v5 }
 0x1e4   : > { %v2150_v63 = vpop.f32.mrf.mxu0  ;;  %v2190_v3 = vpop.f32.mrf.mxu1 }
 0x1e5   : > { %v2218_v4 = vadd.f32 %v2215_v49, %v2194_v55  ;;  %2220 = vst [vmem:[%s198_s11] sm:$0xff] %v2217_v56  ;;  %2222 = vst [vmem:[%s198_s11 + $0x10] sm:$0xff] %v2219_v60 }
 0x1e6   : > { %v2151_v1 = vpop.f32.mrf.mxu0  ;;  %v2564_v6 = vpop.f32.mrf.mxu1 }
 0x1e7   : > { %2221 = vst [vmem:[%s198_s11 + $0x8] sm:$0xff] %v2218_v4 }
 0x1e8   : > { %2665 = shalt.err (!%p2662_p5)
}
 0x1e9   : > { %s2666_s4 = scalar_lea.hbm %s3160_s23, 384  ;;  %s2670_s6 = scalar_lea.hbm %s3211_s3, 768 }
 0x1ea   : > { %p2667_p6 = scmp.ne.s32.totalorder %s3160_s23, %s2666_s4  ;;  %p2671_p10 = scmp.lt.s32.totalorder %s3160_s23, %s3211_s3 }
 0x1eb   : > { %p2672_p11 = scmp.lt.s32.totalorder %s2670_s6, %s2666_s4 }
 0x1ec   : > { %p2668_p7 = pnand %p2667_p6, %p2810_p4 }
 0x1ed   : > { %p2673_p12 = por %p2672_p11, %p2671_p10 }
 0x1ee   : > { %p2669_p9 = pneg %p2668_p7 }
 0x1f0   : > { %p2674_p13 = pnand %p2673_p12, %p2669_p9 }
 0x1f2   : > { %2677 = shalt.err (!%p2674_p13)
}
 0x1f3   : > { %2568 = dma.vmem_to_hbm [thread:$0]  (%p2810_p4), %s3162_s18, 384, %s3160_s23, %s2224_s15  }
 0x1f4 PF: > { %p2574_p0 = scmp.ge.s32.totalorder %s2728_s17, 2  ;;  %s2250_s9 = sand.u32 1, %s2708_s12  }
 0x1f5   : > { %s2251_s10 = scalar_lea.sflag [#allocation4], %s2250_s9 }
 0x1f6   : > { %p2571_p1 = pnand %p2574_p0, %p2817_p8 }
 0x1f8   : > { %p2572_p2 = pneg %p2571_p1 }
 0x1fa   : > { %2703 = dma.done.wait (%p2572_p2), %s2251_s10, 384  }
 0x1fb   : > { %2705 = vsyncadd (%p2572_p2), %s2251_s10, 4294966912  ;;  %s16_s17 = sadd.s32 1, %s2728_s17   ;;  %s3214_s12 = smov %s2712_s13 }
 0x1fc   : > { %p13_p3 = scmp.ge.s32.totalorder %s16_s17, 4   ;;  %s3215_s13 = smov %s2716_s14 }
 0x1fd   : > { %s3216_s14 = smov %s2823_s25  ;;  %s3217_s15 = smov %s2724_s16 }
 0x1fe   : > { %s3218_s16 = smov %s3220_s20  ;;  %15 = sbr.rel (!%p13_p3) target bundleno = 4 (0x4), region = 95 }
 0x203   :  { %2256 = vsyncpa [#allocation4], 1 }
 0x204   :  { %2258 = vsyncpa [#allocation4 + $0x1], 1 }

</bundles_post_ra>
